<compile_context>
chip_gen: v7x
topology: tpu7x:2x2x1
jax: 0.10.0
libtpu: 0.0.40
codegen_flags: <defaults>
</compile_context>

<pallas_src>
import functools

import jax
import jax.numpy as jnp
from jax.experimental import pallas as pl
from jax.experimental.pallas import tpu as pltpu


# ------------------------------- small utils ------------------------------- #

def _round8(n):
    return ((n + 7) // 8) * 8


def _pick_bt(B, per_img_bytes, budget=8 * 1024 * 1024):
    """Images per grid step: fill ~8 MiB of VMEM but keep >= 2 grid steps."""
    bt = max(1, min(B, budget // max(per_img_bytes, 1)))
    while bt > 1 and (B % bt != 0 or B // bt < 2):
        bt -= 1
    return bt


def _cparams():
    # Scoped-VMEM budget kept well under v7x's 64 MiB physical VMEM.
    return pltpu.CompilerParams(dimension_semantics=("parallel",),
                                vmem_limit_bytes=32 * 1024 * 1024)


# ----------------------------- in-kernel helpers --------------------------- #

def _im2col_into(col_ref, flat_ref, *, s0, M, Wp, C, Bt):
    """Fill col_ref (Bt*M, 9*C) bf16 from a flat padded (Bt, S, C) source.

    The padded-row layout (zero border columns at padded-col 0 / Wp-1 and zero
    head/tail rows of size s0 >= Wp+1) makes every shifted 3x3 tap load
    correct without any per-tap wrap masks.
    """
    for bt in range(Bt):
        r0 = bt * M
        for kh in range(3):
            for kw in range(3):
                t = kh * 3 + kw
                off = s0 + (kh - 1) * Wp + (kw - 1)
                col_ref[r0:r0 + M, t * C:(t + 1) * C] = (
                    flat_ref[bt, off:off + M, :])


def _interior_mask(M, Wp, Wo):
    """(M, 1) bool mask: True for real image columns (padded cols 1..Wo)."""
    col_idx = jax.lax.broadcasted_iota(jnp.int32, (M, 1), 0) % Wp
    return jnp.logical_and(col_idx >= 1, col_idx <= Wo)


def _block_s1_kernel(xflat_ref, w1_ref, b1_ref, w2_ref, b2_ref,
                     out_ref, yflat_ref, col_ref, *, s0, M, Wp, Wo, Bt):
    """Fused stride-1 residual block (identity shortcut), padded-row layout."""
    C = xflat_ref.shape[-1]          # == Cout for stride-1 blocks
    interior = _interior_mask(M, Wp, Wo)

    # Zero only the head/tail pad rows of the intermediate scratch (middle
    # rows are fully overwritten below).  Done every step so it stays correct
    # when the "parallel" grid axis is sharded across TensorCores.
    zpad = jnp.zeros((Bt, s0, C), yflat_ref.dtype)
    yflat_ref[:, :s0, :] = zpad
    yflat_ref[:, s0 + M:, :] = zpad

    # conv1 (3x3 / s1 / p1): ONE K=9C bf16 matmul over an in-VMEM im2col.
    _im2col_into(col_ref, xflat_ref, s0=s0, M=M, Wp=Wp, C=C, Bt=Bt)
    y1 = jnp.dot(col_ref[...], w1_ref[...], preferred_element_type=jnp.float32)
    y1 = jnp.maximum(y1 + b1_ref[...], 0.0)
    for bt in range(Bt):
        y1b = jnp.where(interior, y1[bt * M:(bt + 1) * M, :], 0.0)
        yflat_ref[bt, s0:s0 + M, :] = y1b.astype(yflat_ref.dtype)

    # conv2 (3x3 / s1 / p1) straight out of VMEM, then residual add + ReLU.
    _im2col_into(col_ref, yflat_ref, s0=s0, M=M, Wp=Wp, C=C, Bt=Bt)
    y2 = jnp.dot(col_ref[...], w2_ref[...], preferred_element_type=jnp.float32)

    zout = jnp.zeros((s0, C), out_ref.dtype)
    for bt in range(Bt):
        sc = xflat_ref[bt, s0:s0 + M, :].astype(jnp.float32)   # identity
        o = jnp.maximum(y2[bt * M:(bt + 1) * M, :] + b2_ref[...] + sc, 0.0)
        o = jnp.where(interior, o, 0.0)        # keep border columns zero
        out_ref[bt, s0:s0 + M, :] = o.astype(out_ref.dtype)
        out_ref[bt, :s0, :] = zout             # flat-padded layout for the
        out_ref[bt, s0 + M:, :] = zout         # next block's xflat input


def _block_down_kernel(p1_ref, scx_ref, w1_ref, b1_ref, w2_ref, b2_ref,
                       wsc_ref, bsc_ref, out_ref, yflat_ref, col_ref,
                       *, s0, M, Wp, Wo, Bt):
    """Fused downsampling residual block (stride-2 conv1 + 1x1 shortcut)."""
    Cout = out_ref.shape[-1]
    interior = _interior_mask(M, Wp, Wo)

    zpad = jnp.zeros((Bt, s0, Cout), yflat_ref.dtype)
    yflat_ref[:, :s0, :] = zpad
    yflat_ref[:, s0 + M:, :] = zpad

    if Bt == 1:
        p1 = p1_ref[0]
        scx = scx_ref[0]
    else:
        p1 = p1_ref[...].reshape(Bt * M, p1_ref.shape[-1])
        scx = scx_ref[...].reshape(Bt * M, scx_ref.shape[-1])

    # conv1 (3x3, stride 2) as ONE K=9*Cin matmul over host-built bf16 patches.
    y1 = jnp.dot(p1, w1_ref[...], preferred_element_type=jnp.float32)
    y1 = jnp.maximum(y1 + b1_ref[...], 0.0)

    # 1x1 stride-2 projection shortcut (BN folded).
    sc = jnp.dot(scx, wsc_ref[...], preferred_element_type=jnp.float32)
    sc = sc + bsc_ref[...]

    for bt in range(Bt):
        y1b = jnp.where(interior, y1[bt * M:(bt + 1) * M, :], 0.0)
        yflat_ref[bt, s0:s0 + M, :] = y1b.astype(yflat_ref.dtype)

    # conv2 (3x3, stride 1) straight from VMEM: one K=9*Cout matmul.
    _im2col_into(col_ref, yflat_ref, s0=s0, M=M, Wp=Wp, C=Cout, Bt=Bt)
    y2 = jnp.dot(col_ref[...], w2_ref[...], preferred_element_type=jnp.float32)

    zout = jnp.zeros((s0, Cout), out_ref.dtype)
    for bt in range(Bt):
        o = jnp.maximum(y2[bt * M:(bt + 1) * M, :] + b2_ref[...]
                        + sc[bt * M:(bt + 1) * M, :], 0.0)
        o = jnp.where(interior, o, 0.0)
        out_ref[bt, s0:s0 + M, :] = o.astype(out_ref.dtype)
        out_ref[bt, :s0, :] = zout
        out_ref[bt, s0 + M:, :] = zout


# ------------------------------ JAX wrappers ------------------------------- #

def _flatten_padded(x_nhwc, s0, Wp):
    """(B,H,W,C) -> bf16 flat padded (B, 2*s0 + H*Wp, C) layout."""
    B, H, W, C = x_nhwc.shape
    xp = jnp.pad(x_nhwc, ((0, 0), (0, 0), (1, 1), (0, 0)))   # zero border cols
    xf = xp.reshape(B, H * Wp, C)
    xf = jnp.pad(xf, ((0, 0), (s0, s0), (0, 0)))              # head/tail rows
    return xf.astype(jnp.bfloat16)


def _resblock_s1(xflat, blk, geom):
    Ho, Wo, Wp, s0 = geom
    B, S, C = xflat.shape
    M = Ho * Wp
    w1 = blk["w1"].reshape(9 * C, C)
    w2 = blk["w2"].reshape(9 * C, C)

    per_img = 2 * C * (9 * M + 5 * S)          # bf16 bytes per image per step
    Bt = _pick_bt(B, per_img)

    kernel = functools.partial(_block_s1_kernel, s0=s0, M=M, Wp=Wp, Wo=Wo,
                               Bt=Bt)
    out = pl.pallas_call(
        kernel,
        out_shape=jax.ShapeDtypeStruct((B, S, C), jnp.bfloat16),
        grid=(B // Bt,),
        in_specs=[
            pl.BlockSpec((Bt, S, C), lambda b: (b, 0, 0)),
            pl.BlockSpec((9 * C, C), lambda b: (0, 0)),
            pl.BlockSpec((1, C), lambda b: (0, 0)),
            pl.BlockSpec((9 * C, C), lambda b: (0, 0)),
            pl.BlockSpec((1, C), lambda b: (0, 0)),
        ],
        out_specs=pl.BlockSpec((Bt, S, C), lambda b: (b, 0, 0)),
        scratch_shapes=[pltpu.VMEM((Bt, S, C), jnp.bfloat16),
                        pltpu.VMEM((Bt * M, 9 * C), jnp.bfloat16)],
        compiler_params=_cparams(),
    )(xflat, w1, blk["b1"], w2, blk["b2"])
    return out, geom


def _resblock_down(x, blk):
    B, H, W, Cin = x.shape
    Cout = blk["b1"].shape[-1]
    Ho = (H + 2 - 3) // 2 + 1
    Wo = (W + 2 - 3) // 2 + 1
    Wp = Wo + 2
    s0 = _round8(Wp + 1)
    M = Ho * Wp
    S = 2 * s0 + M

    # Host-built 3x3/stride-2 patches, already in the padded OUTPUT geometry
    # (zero patches at the border columns), stored to HBM in bf16.
    xp = jnp.pad(x, ((0, 0), (1, 1), (1, 1), (0, 0)))
    taps = []
    for kh in range(3):
        for kw in range(3):
            taps.append(xp[:, kh:kh + 2 * Ho - 1:2, kw:kw + 2 * Wo - 1:2, :])
    p1 = jnp.concatenate(taps, axis=-1)                        # (B,Ho,Wo,9Cin)
    p1 = jnp.pad(p1, ((0, 0), (0, 0), (1, 1), (0, 0)))
    p1 = p1.reshape(B, M, 9 * Cin).astype(jnp.bfloat16)

    scx = jnp.pad(x[:, ::2, ::2, :], ((0, 0), (0, 0), (1, 1), (0, 0)))
    scx = scx.reshape(B, M, Cin).astype(jnp.bfloat16)

    w1 = blk["w1"].reshape(9 * Cin, Cout)
    w2 = blk["w2"].reshape(9 * Cout, Cout)
    wsc = blk["wsc"].reshape(Cin, Cout)

    per_img = 2 * (2 * M * 9 * Cin + 2 * M * Cin
                   + 3 * S * Cout + 9 * M * Cout)
    Bt = _pick_bt(B, per_img)

    kernel = functools.partial(_block_down_kernel, s0=s0, M=M, Wp=Wp, Wo=Wo,
                               Bt=Bt)
    out = pl.pallas_call(
        kernel,
        out_shape=jax.ShapeDtypeStruct((B, S, Cout), jnp.bfloat16),
        grid=(B // Bt,),
        in_specs=[
            pl.BlockSpec((Bt, M, 9 * Cin), lambda b: (b, 0, 0)),
            pl.BlockSpec((Bt, M, Cin), lambda b: (b, 0, 0)),
            pl.BlockSpec((9 * Cin, Cout), lambda b: (0, 0)),
            pl.BlockSpec((1, Cout), lambda b: (0, 0)),
            pl.BlockSpec((9 * Cout, Cout), lambda b: (0, 0)),
            pl.BlockSpec((1, Cout), lambda b: (0, 0)),
            pl.BlockSpec((Cin, Cout), lambda b: (0, 0)),
            pl.BlockSpec((1, Cout), lambda b: (0, 0)),
        ],
        out_specs=pl.BlockSpec((Bt, S, Cout), lambda b: (b, 0, 0)),
        scratch_shapes=[pltpu.VMEM((Bt, S, Cout), jnp.bfloat16),
                        pltpu.VMEM((Bt * M, 9 * Cout), jnp.bfloat16)],
        compiler_params=_cparams(),
    )(p1, scx, w1, blk["b1"], w2, blk["b2"], wsc, blk["bsc"])
    return out, (Ho, Wo, Wp, s0)


def resgroup_forward(x_nchw, blocks):
    # NCHW (PyTorch) -> NHWC for kernels -> back to NCHW.
    x = jnp.transpose(x_nchw, (0, 2, 3, 1)).astype(jnp.float32)
    flat, geom = None, None
    for blk in blocks:
        if blk["up"]:
            flat, geom = _resblock_down(x, blk)
        else:
            if flat is None:                       # group 0: no downsample
                B, H, W, _ = x.shape
                Wp = W + 2
                s0 = _round8(Wp + 1)
                geom = (H, W, Wp, s0)
                flat = _flatten_padded(x, s0, Wp)
            flat, geom = _resblock_s1(flat, blk, geom)
    Ho, Wo, Wp, s0 = geom
    B, _, C = flat.shape
    img = flat[:, s0:s0 + Ho * Wp, :].reshape(B, Ho, Wp, C)[:, :, 1:1 + Wo, :]
    return jnp.transpose(img.astype(jnp.float32), (0, 3, 1, 2))


# --------------------------- deterministic init ---------------------------- #

def _fold_bn_into_conv(key, w_hwio):
    """Fold eval-mode BN (synthetic running stats) into the conv weights."""
    c = w_hwio.shape[-1]
    k1, k2, k3, k4 = jax.random.split(key, 4)
    gamma = 1.0 + 0.1 * jax.random.normal(k1, (c,), jnp.float32)
    beta = 0.1 * jax.random.normal(k2, (c,), jnp.float32)
    mean = 0.1 * jax.random.normal(k3, (c,), jnp.float32)
    var = 1.0 + 0.1 * jnp.abs(jax.random.normal(k4, (c,), jnp.float32))
    scale = gamma * jax.lax.rsqrt(var + 1e-5)
    bias = (beta - mean * scale).reshape(1, c).astype(jnp.float32)
    w_folded = (w_hwio * scale).astype(jnp.bfloat16)   # bf16 MXU weights
    return w_folded, bias


def init_resgroup_params(key, group_id, n, num_input, num_output):
    up = group_id != 0
    blocks = []
    c_in = num_input
    for i in range(n):
        block_up = up and (i == 0)
        key, k1, k2, k3, k4, k5, k6 = jax.random.split(key, 7)
        w1, b1 = _fold_bn_into_conv(
            k2, 0.1 * jax.random.normal(k1, (3, 3, c_in, num_output),
                                        jnp.float32))
        w2, b2 = _fold_bn_into_conv(
            k4, 0.1 * jax.random.normal(k3, (3, 3, num_output, num_output),
                                        jnp.float32))
        blk = {"up": block_up, "w1": w1, "b1": b1, "w2": w2, "b2": b2}
        if block_up:
            wsc, bsc = _fold_bn_into_conv(
                k6, 0.1 * jax.random.normal(k5, (1, 1, c_in, num_output),
                                            jnp.float32))
            blk["wsc"], blk["bsc"] = wsc, bsc
        blocks.append(blk)
        c_in = num_output
    return blocks


# ------------------------------ pure-JAX ref ------------------------------- #

def _conv_ref(x, w_bf16, stride, pad):
    # Same precision contract as the kernels: bf16 inputs, f32 accumulation.
    return jax.lax.conv_general_dilated(
        x.astype(jnp.bfloat16), w_bf16,
        window_strides=(stride, stride),
        padding=[(pad, pad), (pad, pad)],
        dimension_numbers=("NHWC", "HWIO", "NHWC"),
        preferred_element_type=jnp.float32)


def resgroup_ref(x_nchw, blocks):
    x = jnp.transpose(x_nchw, (0, 2, 3, 1))
    for blk in blocks:
        if blk["up"]:
            sc = _conv_ref(x, blk["wsc"], 2, 0) + blk["bsc"]
            stride = 2
        else:
            sc = x
            stride = 1
        y = jnp.maximum(_conv_ref(x, blk["w1"], stride, 1) + blk["b1"], 0.0)
        x = jnp.maximum(_conv_ref(y, blk["w2"], 1, 1) + blk["b2"] + sc, 0.0)
    return jnp.transpose(x, (0, 3, 1, 2))


# ---------------------------------- main ----------------------------------- #

if __name__ == "__main__":
    key = jax.random.PRNGKey(0)
    key, kx = jax.random.split(key)

    B, C_in, H, W = 2, 4, 16, 16          # small NCHW input
    group_id, n_blocks, C_out = 1, 2, 8   # group 1 -> first block downsamples

    x = jax.random.normal(kx, (B, C_in, H, W), jnp.float32)
    blocks = init_resgroup_params(key, group_id, n_blocks, C_in, C_out)

    out = jax.block_until_ready(resgroup_forward(x, blocks))
    assert out.shape == (B, C_out, H // 2, W // 2), out.shape

    ref = resgroup_ref(x, blocks)
    max_err = float(jnp.max(jnp.abs(out - ref)))
    # bf16 MXU inputs, bf16 inter-block activations / identity shortcut
    # (f32 accumulation and epilogue) -> loosened tolerance vs f32 math.
    assert jnp.allclose(out, ref, atol=5e-2, rtol=5e-2), max_err

    print("KERNEL_OK")
</pallas_src>

<mosaic_0001>
module attributes {stable_mosaic.version = 11 : i64} {
  func.func @_block_down_kernel(%arg0: i32, %arg1: memref<1x80x36xbf16, #tpu.memory_space<vmem>>, %arg2: memref<1x80x4xbf16, #tpu.memory_space<vmem>>, %arg3: memref<36x8xbf16, #tpu.memory_space<vmem>>, %arg4: memref<1x8xf32, #tpu.memory_space<vmem>>, %arg5: memref<72x8xbf16, #tpu.memory_space<vmem>>, %arg6: memref<1x8xf32, #tpu.memory_space<vmem>>, %arg7: memref<4x8xbf16, #tpu.memory_space<vmem>>, %arg8: memref<1x8xf32, #tpu.memory_space<vmem>>, %arg9: memref<1x112x8xbf16, #tpu.memory_space<vmem>>, %arg10: memref<1x112x8xbf16, #tpu.memory_space<vmem>>, %arg11: memref<80x72xbf16, #tpu.memory_space<vmem>>) attributes {dimension_semantics = [#tpu.dimension_semantics<parallel>], iteration_bounds = array<i64: 2>, scalar_prefetch = 0 : i64, scratch_operands = 2 : i64, tpu.core_type = #tpu.core_type<tc>, window_params = [{transform_indices = @transform_0, window_bounds = array<i64: 1, 80, 36>}, {transform_indices = @transform_1, window_bounds = array<i64: 1, 80, 4>}, {pipeline_mode = #tpu.pipeline_mode<synchronous>, transform_indices = @transform_2, window_bounds = array<i64: 36, 8>}, {pipeline_mode = #tpu.pipeline_mode<synchronous>, transform_indices = @transform_3, window_bounds = array<i64: 1, 8>}, {pipeline_mode = #tpu.pipeline_mode<synchronous>, transform_indices = @transform_4, window_bounds = array<i64: 72, 8>}, {pipeline_mode = #tpu.pipeline_mode<synchronous>, transform_indices = @transform_5, window_bounds = array<i64: 1, 8>}, {pipeline_mode = #tpu.pipeline_mode<synchronous>, transform_indices = @transform_6, window_bounds = array<i64: 4, 8>}, {pipeline_mode = #tpu.pipeline_mode<synchronous>, transform_indices = @transform_7, window_bounds = array<i64: 1, 8>}, {transform_indices = @transform_8, window_bounds = array<i64: 1, 112, 8>}]} {
    %0 = tpu.iota {dimensions = array<i32: 0>} : vector<80x1xi32>
    %c10_i32 = arith.constant 10 : i32
    %c0_i32 = arith.constant 0 : i32
    %1 = arith.cmpi eq, %c10_i32, %c0_i32 : i32
    %c1_i32 = arith.constant 1 : i32
    %2 = arith.select %1, %c1_i32, %c10_i32 : i32
    %3 = vector.broadcast %2 : i32 to vector<80x1xi32>
    %4 = arith.remsi %0, %3 : vector<80x1xi32>
    %c0_i32_0 = arith.constant 0 : i32
    %5 = vector.broadcast %c0_i32_0 : i32 to vector<80x1xi32>
    %6 = arith.cmpi ne, %4, %5 : vector<80x1xi32>
    %c0_i32_1 = arith.constant 0 : i32
    %7 = vector.broadcast %c0_i32_1 : i32 to vector<80x1xi32>
    %8 = arith.cmpi slt, %4, %7 : vector<80x1xi32>
    %c0_i32_2 = arith.constant 0 : i32
    %9 = arith.cmpi slt, %2, %c0_i32_2 : i32
    %10 = vector.broadcast %9 : i1 to vector<80x1xi1>
    %11 = vector.broadcast %10 : vector<80x1xi1> to vector<80x1xi1>
    %12 = arith.xori %8, %11 : vector<80x1xi1>
    %13 = arith.andi %12, %6 : vector<80x1xi1>
    %14 = vector.broadcast %2 : i32 to vector<80x1xi32>
    %15 = arith.addi %4, %14 : vector<80x1xi32>
    %16 = arith.select %13, %15, %4 : vector<80x1xi1>, vector<80x1xi32>
    %c1_i32_3 = arith.constant 1 : i32
    %17 = vector.broadcast %c1_i32_3 : i32 to vector<80x1xi32>
    %18 = arith.cmpi sge, %16, %17 : vector<80x1xi32>
    %c8_i32 = arith.constant 8 : i32
    %19 = vector.broadcast %c8_i32 : i32 to vector<80x1xi32>
    %20 = arith.cmpi sle, %16, %19 : vector<80x1xi32>
    %21 = arith.andi %18, %20 : vector<80x1xi1>
    %cst = arith.constant 0.000000e+00 : bf16
    %22 = vector.broadcast %cst : bf16 to vector<1x16x8xbf16>
    %c0 = arith.constant 0 : index
    %c0_4 = arith.constant 0 : index
    %c0_5 = arith.constant 0 : index
    %23 = vector.load %arg10[%c0, %c0_4, %c0_5] : memref<1x112x8xbf16, #tpu.memory_space<vmem>>, vector<1x16x8xbf16>
    tpu.vector_store %arg10[%c0, %c0_4, %c0_5], %22 {strides = array<i32>} : memref<1x112x8xbf16, #tpu.memory_space<vmem>>, vector<1x16x8xbf16>,
    %c0_6 = arith.constant 0 : index
    %c96 = arith.constant 96 : index
    %c0_7 = arith.constant 0 : index
    %24 = vector.load %arg10[%c0_6, %c96, %c0_7] : memref<1x112x8xbf16, #tpu.memory_space<vmem>>, vector<1x16x8xbf16>
    tpu.vector_store %arg10[%c0_6, %c96, %c0_7], %22 {strides = array<i32>} : memref<1x112x8xbf16, #tpu.memory_space<vmem>>, vector<1x16x8xbf16>,
    %c0_8 = arith.constant 0 : index
    %c0_9 = arith.constant 0 : index
    %c0_10 = arith.constant 0 : index
    %25 = vector.load %arg1[%c0_8, %c0_9, %c0_10] : memref<1x80x36xbf16, #tpu.memory_space<vmem>>, vector<1x80x36xbf16>
    %26 = vector.shape_cast %25 : vector<1x80x36xbf16> to vector<80x36xbf16>
    %c0_11 = arith.constant 0 : index
    %c0_12 = arith.constant 0 : index
    %c0_13 = arith.constant 0 : index
    %27 = vector.load %arg2[%c0_11, %c0_12, %c0_13] : memref<1x80x4xbf16, #tpu.memory_space<vmem>>, vector<1x80x4xbf16>
    %28 = vector.shape_cast %27 : vector<1x80x4xbf16> to vector<80x4xbf16>
    %c0_14 = arith.constant 0 : index
    %c0_15 = arith.constant 0 : index
    %29 = vector.load %arg3[%c0_14, %c0_15] : memref<36x8xbf16, #tpu.memory_space<vmem>>, vector<36x8xbf16>
    %cst_16 = arith.constant dense<0.000000e+00> : vector<80x8xf32>
    %30 = tpu.matmul %26, %29, %cst_16 {dimension_numbers = #tpu.dot_dimension_numbers<[1], [0], [0], [1], [0, 0, 1, 1], [], []>} : vector<80x36xbf16>, vector<36x8xbf16>, vector<80x8xf32> -> vector<80x8xf32>
    %c0_17 = arith.constant 0 : index
    %c0_18 = arith.constant 0 : index
    %31 = vector.load %arg4[%c0_17, %c0_18] : memref<1x8xf32, #tpu.memory_space<vmem>>, vector<1x8xf32>
    %32 = vector.broadcast %31 : vector<1x8xf32> to vector<80x8xf32>
    %33 = arith.addf %30, %32 : vector<80x8xf32>
    %cst_19 = arith.constant 0.000000e+00 : f32
    %34 = vector.broadcast %cst_19 : f32 to vector<80x8xf32>
    %35 = arith.maximumf %33, %34 : vector<80x8xf32>
    %c0_20 = arith.constant 0 : index
    %c0_21 = arith.constant 0 : index
    %36 = vector.load %arg7[%c0_20, %c0_21] : memref<4x8xbf16, #tpu.memory_space<vmem>>, vector<4x8xbf16>
    %cst_22 = arith.constant dense<0.000000e+00> : vector<80x8xf32>
    %37 = tpu.matmul %28, %36, %cst_22 {dimension_numbers = #tpu.dot_dimension_numbers<[1], [0], [0], [1], [0, 0, 1, 1], [], []>} : vector<80x4xbf16>, vector<4x8xbf16>, vector<80x8xf32> -> vector<80x8xf32>
    %c0_23 = arith.constant 0 : index
    %c0_24 = arith.constant 0 : index
    %38 = vector.load %arg8[%c0_23, %c0_24] : memref<1x8xf32, #tpu.memory_space<vmem>>, vector<1x8xf32>
    %39 = vector.broadcast %38 : vector<1x8xf32> to vector<80x8xf32>
    %40 = arith.addf %37, %39 : vector<80x8xf32>
    %cst_25 = arith.constant 0.000000e+00 : f32
    %41 = vector.shape_cast %21 : vector<80x1xi1> to vector<80x1xi1>
    %42 = vector.broadcast %41 : vector<80x1xi1> to vector<80x8xi1>
    %43 = vector.broadcast %cst_25 : f32 to vector<80x8xf32>
    %44 = arith.select %42, %35, %43 : vector<80x8xi1>, vector<80x8xf32>
    %45 = arith.truncf %44 : vector<80x8xf32> to vector<80x8xbf16>
    %c0_26 = arith.constant 0 : index
    %c16 = arith.constant 16 : index
    %c0_27 = arith.constant 0 : index
    %46 = vector.load %arg10[%c0_26, %c16, %c0_27] : memref<1x112x8xbf16, #tpu.memory_space<vmem>>, vector<1x80x8xbf16>
    %47 = vector.shape_cast %46 : vector<1x80x8xbf16> to vector<80x8xbf16>
    %48 = vector.shape_cast %45 : vector<80x8xbf16> to vector<1x80x8xbf16>
    tpu.vector_store %arg10[%c0_26, %c16, %c0_27], %48 {strides = array<i32>} : memref<1x112x8xbf16, #tpu.memory_space<vmem>>, vector<1x80x8xbf16>,
    %c0_28 = arith.constant 0 : index
    %c5 = arith.constant 5 : index
    %c0_29 = arith.constant 0 : index
    %49 = vector.load %arg10[%c0_28, %c5, %c0_29] : memref<1x112x8xbf16, #tpu.memory_space<vmem>>, vector<1x80x8xbf16>
    %50 = vector.shape_cast %49 : vector<1x80x8xbf16> to vector<80x8xbf16>
    %c0_30 = arith.constant 0 : index
    %c0_31 = arith.constant 0 : index
    %51 = vector.load %arg11[%c0_30, %c0_31] : memref<80x72xbf16, #tpu.memory_space<vmem>>, vector<80x8xbf16>
    tpu.vector_store %arg11[%c0_30, %c0_31], %50 {strides = array<i32>} : memref<80x72xbf16, #tpu.memory_space<vmem>>, vector<80x8xbf16>,
    %c0_32 = arith.constant 0 : index
    %c6 = arith.constant 6 : index
    %c0_33 = arith.constant 0 : index
    %52 = vector.load %arg10[%c0_32, %c6, %c0_33] : memref<1x112x8xbf16, #tpu.memory_space<vmem>>, vector<1x80x8xbf16>
    %53 = vector.shape_cast %52 : vector<1x80x8xbf16> to vector<80x8xbf16>
    %c0_34 = arith.constant 0 : index
    %c8 = arith.constant 8 : index
    %54 = vector.load %arg11[%c0_34, %c8] : memref<80x72xbf16, #tpu.memory_space<vmem>>, vector<80x8xbf16>
    tpu.vector_store %arg11[%c0_34, %c8], %53 {strides = array<i32>} : memref<80x72xbf16, #tpu.memory_space<vmem>>, vector<80x8xbf16>,
    %c0_35 = arith.constant 0 : index
    %c7 = arith.constant 7 : index
    %c0_36 = arith.constant 0 : index
    %55 = vector.load %arg10[%c0_35, %c7, %c0_36] : memref<1x112x8xbf16, #tpu.memory_space<vmem>>, vector<1x80x8xbf16>
    %56 = vector.shape_cast %55 : vector<1x80x8xbf16> to vector<80x8xbf16>
    %c0_37 = arith.constant 0 : index
    %c16_38 = arith.constant 16 : index
    %57 = vector.load %arg11[%c0_37, %c16_38] : memref<80x72xbf16, #tpu.memory_space<vmem>>, vector<80x8xbf16>
    tpu.vector_store %arg11[%c0_37, %c16_38], %56 {strides = array<i32>} : memref<80x72xbf16, #tpu.memory_space<vmem>>, vector<80x8xbf16>,
    %c0_39 = arith.constant 0 : index
    %c15 = arith.constant 15 : index
    %c0_40 = arith.constant 0 : index
    %58 = vector.load %arg10[%c0_39, %c15, %c0_40] : memref<1x112x8xbf16, #tpu.memory_space<vmem>>, vector<1x80x8xbf16>
    %59 = vector.shape_cast %58 : vector<1x80x8xbf16> to vector<80x8xbf16>
    %c0_41 = arith.constant 0 : index
    %c24 = arith.constant 24 : index
    %60 = vector.load %arg11[%c0_41, %c24] : memref<80x72xbf16, #tpu.memory_space<vmem>>, vector<80x8xbf16>
    tpu.vector_store %arg11[%c0_41, %c24], %59 {strides = array<i32>} : memref<80x72xbf16, #tpu.memory_space<vmem>>, vector<80x8xbf16>,
    %c0_42 = arith.constant 0 : index
    %c16_43 = arith.constant 16 : index
    %c0_44 = arith.constant 0 : index
    %61 = vector.load %arg10[%c0_42, %c16_43, %c0_44] : memref<1x112x8xbf16, #tpu.memory_space<vmem>>, vector<1x80x8xbf16>
    %62 = vector.shape_cast %61 : vector<1x80x8xbf16> to vector<80x8xbf16>
    %c0_45 = arith.constant 0 : index
    %c32 = arith.constant 32 : index
    %63 = vector.load %arg11[%c0_45, %c32] : memref<80x72xbf16, #tpu.memory_space<vmem>>, vector<80x8xbf16>
    tpu.vector_store %arg11[%c0_45, %c32], %62 {strides = array<i32>} : memref<80x72xbf16, #tpu.memory_space<vmem>>, vector<80x8xbf16>,
    %c0_46 = arith.constant 0 : index
    %c17 = arith.constant 17 : index
    %c0_47 = arith.constant 0 : index
    %64 = vector.load %arg10[%c0_46, %c17, %c0_47] : memref<1x112x8xbf16, #tpu.memory_space<vmem>>, vector<1x80x8xbf16>
    %65 = vector.shape_cast %64 : vector<1x80x8xbf16> to vector<80x8xbf16>
    %c0_48 = arith.constant 0 : index
    %c40 = arith.constant 40 : index
    %66 = vector.load %arg11[%c0_48, %c40] : memref<80x72xbf16, #tpu.memory_space<vmem>>, vector<80x8xbf16>
    tpu.vector_store %arg11[%c0_48, %c40], %65 {strides = array<i32>} : memref<80x72xbf16, #tpu.memory_space<vmem>>, vector<80x8xbf16>,
    %c0_49 = arith.constant 0 : index
    %c25 = arith.constant 25 : index
    %c0_50 = arith.constant 0 : index
    %67 = vector.load %arg10[%c0_49, %c25, %c0_50] : memref<1x112x8xbf16, #tpu.memory_space<vmem>>, vector<1x80x8xbf16>
    %68 = vector.shape_cast %67 : vector<1x80x8xbf16> to vector<80x8xbf16>
    %c0_51 = arith.constant 0 : index
    %c48 = arith.constant 48 : index
    %69 = vector.load %arg11[%c0_51, %c48] : memref<80x72xbf16, #tpu.memory_space<vmem>>, vector<80x8xbf16>
    tpu.vector_store %arg11[%c0_51, %c48], %68 {strides = array<i32>} : memref<80x72xbf16, #tpu.memory_space<vmem>>, vector<80x8xbf16>,
    %c0_52 = arith.constant 0 : index
    %c26 = arith.constant 26 : index
    %c0_53 = arith.constant 0 : index
    %70 = vector.load %arg10[%c0_52, %c26, %c0_53] : memref<1x112x8xbf16, #tpu.memory_space<vmem>>, vector<1x80x8xbf16>
    %71 = vector.shape_cast %70 : vector<1x80x8xbf16> to vector<80x8xbf16>
    %c0_54 = arith.constant 0 : index
    %c56 = arith.constant 56 : index
    %72 = vector.load %arg11[%c0_54, %c56] : memref<80x72xbf16, #tpu.memory_space<vmem>>, vector<80x8xbf16>
    tpu.vector_store %arg11[%c0_54, %c56], %71 {strides = array<i32>} : memref<80x72xbf16, #tpu.memory_space<vmem>>, vector<80x8xbf16>,
    %c0_55 = arith.constant 0 : index
    %c27 = arith.constant 27 : index
    %c0_56 = arith.constant 0 : index
    %73 = vector.load %arg10[%c0_55, %c27, %c0_56] : memref<1x112x8xbf16, #tpu.memory_space<vmem>>, vector<1x80x8xbf16>
    %74 = vector.shape_cast %73 : vector<1x80x8xbf16> to vector<80x8xbf16>
    %c0_57 = arith.constant 0 : index
    %c64 = arith.constant 64 : index
    %75 = vector.load %arg11[%c0_57, %c64] : memref<80x72xbf16, #tpu.memory_space<vmem>>, vector<80x8xbf16>
    tpu.vector_store %arg11[%c0_57, %c64], %74 {strides = array<i32>} : memref<80x72xbf16, #tpu.memory_space<vmem>>, vector<80x8xbf16>,
    %c0_58 = arith.constant 0 : index
    %c0_59 = arith.constant 0 : index
    %76 = vector.load %arg11[%c0_58, %c0_59] : memref<80x72xbf16, #tpu.memory_space<vmem>>, vector<80x72xbf16>
    %c0_60 = arith.constant 0 : index
    %c0_61 = arith.constant 0 : index
    %77 = vector.load %arg5[%c0_60, %c0_61] : memref<72x8xbf16, #tpu.memory_space<vmem>>, vector<72x8xbf16>
    %cst_62 = arith.constant dense<0.000000e+00> : vector<80x8xf32>
    %78 = tpu.matmul %76, %77, %cst_62 {dimension_numbers = #tpu.dot_dimension_numbers<[1], [0], [0], [1], [0, 0, 1, 1], [], []>} : vector<80x72xbf16>, vector<72x8xbf16>, vector<80x8xf32> -> vector<80x8xf32>
    %cst_63 = arith.constant 0.000000e+00 : bf16
    %79 = vector.broadcast %cst_63 : bf16 to vector<16x8xbf16>
    %c0_64 = arith.constant 0 : index
    %c0_65 = arith.constant 0 : index
    %80 = vector.load %arg6[%c0_64, %c0_65] : memref<1x8xf32, #tpu.memory_space<vmem>>, vector<1x8xf32>
    %81 = vector.broadcast %80 : vector<1x8xf32> to vector<80x8xf32>
    %82 = arith.addf %78, %81 : vector<80x8xf32>
    %83 = arith.addf %82, %40 : vector<80x8xf32>
    %cst_66 = arith.constant 0.000000e+00 : f32
    %84 = vector.broadcast %cst_66 : f32 to vector<80x8xf32>
    %85 = arith.maximumf %83, %84 : vector<80x8xf32>
    %cst_67 = arith.constant 0.000000e+00 : f32
    %86 = vector.shape_cast %21 : vector<80x1xi1> to vector<80x1xi1>
    %87 = vector.broadcast %86 : vector<80x1xi1> to vector<80x8xi1>
    %88 = vector.broadcast %cst_67 : f32 to vector<80x8xf32>
    %89 = arith.select %87, %85, %88 : vector<80x8xi1>, vector<80x8xf32>
    %90 = arith.truncf %89 : vector<80x8xf32> to vector<80x8xbf16>
    %c0_68 = arith.constant 0 : index
    %c16_69 = arith.constant 16 : index
    %c0_70 = arith.constant 0 : index
    %91 = vector.load %arg9[%c0_68, %c16_69, %c0_70] : memref<1x112x8xbf16, #tpu.memory_space<vmem>>, vector<1x80x8xbf16>
    %92 = vector.shape_cast %91 : vector<1x80x8xbf16> to vector<80x8xbf16>
    %93 = vector.shape_cast %90 : vector<80x8xbf16> to vector<1x80x8xbf16>
    tpu.vector_store %arg9[%c0_68, %c16_69, %c0_70], %93 {strides = array<i32>} : memref<1x112x8xbf16, #tpu.memory_space<vmem>>, vector<1x80x8xbf16>,
    %c0_71 = arith.constant 0 : index
    %c0_72 = arith.constant 0 : index
    %c0_73 = arith.constant 0 : index
    %94 = vector.load %arg9[%c0_71, %c0_72, %c0_73] : memref<1x112x8xbf16, #tpu.memory_space<vmem>>, vector<1x16x8xbf16>
    %95 = vector.shape_cast %94 : vector<1x16x8xbf16> to vector<16x8xbf16>
    %96 = vector.shape_cast %79 : vector<16x8xbf16> to vector<1x16x8xbf16>
    tpu.vector_store %arg9[%c0_71, %c0_72, %c0_73], %96 {strides = array<i32>} : memref<1x112x8xbf16, #tpu.memory_space<vmem>>, vector<1x16x8xbf16>,
    %c0_74 = arith.constant 0 : index
    %c96_75 = arith.constant 96 : index
    %c0_76 = arith.constant 0 : index
    %97 = vector.load %arg9[%c0_74, %c96_75, %c0_76] : memref<1x112x8xbf16, #tpu.memory_space<vmem>>, vector<1x16x8xbf16>
    %98 = vector.shape_cast %97 : vector<1x16x8xbf16> to vector<16x8xbf16>
    %99 = vector.shape_cast %79 : vector<16x8xbf16> to vector<1x16x8xbf16>
    tpu.vector_store %arg9[%c0_74, %c96_75, %c0_76], %99 {strides = array<i32>} : memref<1x112x8xbf16, #tpu.memory_space<vmem>>, vector<1x16x8xbf16>,
    return
  }
  func.func @transform_0(%arg0: i32) -> (i32, i32, i32) {
    %c0_i32 = arith.constant 0 : i32
    %c0_i32_0 = arith.constant 0 : i32
    %c0_i32_1 = arith.constant 0 : i32
    return %arg0, %c0_i32, %c0_i32_0 : i32, i32, i32
  }
  func.func @transform_1(%arg0: i32) -> (i32, i32, i32) {
    %c0_i32 = arith.constant 0 : i32
    %c0_i32_0 = arith.constant 0 : i32
    %c0_i32_1 = arith.constant 0 : i32
    return %arg0, %c0_i32, %c0_i32_0 : i32, i32, i32
  }
  func.func @transform_2(%arg0: i32) -> (i32, i32) {
    %c0_i32 = arith.constant 0 : i32
    %c0_i32_0 = arith.constant 0 : i32
    %c0_i32_1 = arith.constant 0 : i32
    return %c0_i32, %c0_i32_0 : i32, i32
  }
  func.func @transform_3(%arg0: i32) -> (i32, i32) {
    %c0_i32 = arith.constant 0 : i32
    %c0_i32_0 = arith.constant 0 : i32
    %c0_i32_1 = arith.constant 0 : i32
    return %c0_i32, %c0_i32_0 : i32, i32
  }
  func.func @transform_4(%arg0: i32) -> (i32, i32) {
    %c0_i32 = arith.constant 0 : i32
    %c0_i32_0 = arith.constant 0 : i32
    %c0_i32_1 = arith.constant 0 : i32
    return %c0_i32, %c0_i32_0 : i32, i32
  }
  func.func @transform_5(%arg0: i32) -> (i32, i32) {
    %c0_i32 = arith.constant 0 : i32
    %c0_i32_0 = arith.constant 0 : i32
    %c0_i32_1 = arith.constant 0 : i32
    return %c0_i32, %c0_i32_0 : i32, i32
  }
  func.func @transform_6(%arg0: i32) -> (i32, i32) {
    %c0_i32 = arith.constant 0 : i32
    %c0_i32_0 = arith.constant 0 : i32
    %c0_i32_1 = arith.constant 0 : i32
    return %c0_i32, %c0_i32_0 : i32, i32
  }
  func.func @transform_7(%arg0: i32) -> (i32, i32) {
    %c0_i32 = arith.constant 0 : i32
    %c0_i32_0 = arith.constant 0 : i32
    %c0_i32_1 = arith.constant 0 : i32
    return %c0_i32, %c0_i32_0 : i32, i32
  }
  func.func @transform_8(%arg0: i32) -> (i32, i32, i32) {
    %c0_i32 = arith.constant 0 : i32
    %c0_i32_0 = arith.constant 0 : i32
    %c0_i32_1 = arith.constant 0 : i32
    return %arg0, %c0_i32, %c0_i32_0 : i32, i32, i32
  }
}

</mosaic_0001>

<bundles_post_ra>
// kernel: tpu_custom_call.1
= control target key start
LH: loop header
LB: loop body
LE: loop exit
PB: predicated region body
PF: predicated region fallthrough
CT: control target
= control target key end

     0   :  { %s2071_s27 = smov 0   ;;  %s2827_s0 = inlined_call_operand.vmem [shape: bf16[2,80,36], index: 0, kind: input, shape index: {}]   ;;  %s2828_s1 = inlined_call_operand.vmem [shape: bf16[2,80,4], index: 1, kind: input, shape index: {}]   ;;  %s2829_s2 = inlined_call_operand.vmem [shape: bf16[36,8], index: 2, kind: input, shape index: {}]   ;;  %s2830_s3 = inlined_call_operand.vmem [shape: f32[1,8], index: 3, kind: input, shape index: {}]   ;;  %s2831_s4 = inlined_call_operand.vmem [shape: bf16[72,8], index: 4, kind: input, shape index: {}]   ;;  %s2832_s5 = inlined_call_operand.vmem [shape: f32[1,8], index: 5, kind: input, shape index: {}]   ;;  %s2833_s6 = inlined_call_operand.vmem [shape: bf16[4,8], index: 6, kind: input, shape index: {}]   ;;  %s2834_s7 = inlined_call_operand.vmem [shape: f32[1,8], index: 7, kind: input, shape index: {}]   ;;  %s2835_s8 = inlined_call_operand.vmem [shape: bf16[2,112,8], index: 8, kind: output, shape index: {}]  }
   0x1 LB: > { %s1742_s28 = sadd.s32 4294967295, %s2013_s27   ;;  %p1746_p0 = scmp.ge.s32.totalorder %s2013_s27, 1  ;;  %s2013_s27 = sphi %s2071_s27, %s18_s27  }
   0x2   : > { %p272_p1 = scmp.lt.s32.totalorder %s2013_s27, 3 }
   0x4   : > { %p273_p2 = pnand %p1746_p0, %p272_p1 }
   0x5   : > { %v1989_v0 = vld [vmem:[%s2829_s2] sm:$0xff] (!%p273_p2)   ;;  %v2015_v1 = vmov (!%p273_p2), 0.0   ;;  %v1990_v2 = vld [vmem:[%s2829_s2 + $0x8] sm:$0xff] (!%p273_p2)   ;;  %v1991_v3 = vld [vmem:[%s2829_s2 + $0x10] ss:$0 sps:$4 sm:$0x33] (!%p273_p2)   ;;  %v327_v11 = vlaneseq (!%p273_p2) }
   0x6   : > { %276 = sbr.rel (%p273_p2) target bundleno = 673 (0x2a1), region = 52  ;;  %1832 = vmatprep.subr.bf16.mxu0 (!%p273_p2), %v2015_v1  ;;  %1910 = vmatprep.subr.bf16.mxu1 (!%p273_p2), %v2015_v1  ;;  %vm2837_vm0 = vmmov (!%p273_p2), 0   ;;  %p311_p3 = scmp.lt.s32.totalorder (!%p273_p2), %s1742_s28, 1  ;;  %vm619_vm1 = vcmask (!%p273_p2), 1041408   ;;  %vm603_vm2 = vcmask (!%p273_p2), 293888   ;;  %vm528_vm3 = vcmask (!%p273_p2), 64512  }
   0x7   : > { %1833 = vmatpush3.bf16.msra.mxu0 (!%p273_p2), %v1989_v0  ;;  %1838 = vmatprep.mubr.msk.bf16.mxu0 (!%p273_p2), %vm2837_vm0, %v2015_v1  ;;  %v621_v4 = vsel (!%p273_p2), %vm619_vm1, %v1991_v3, 0  ;;  %v2017_v10 = vmov (!%p273_p2), 0   ;;  %vm2836_vm4 = vcmask (!%p273_p2), 60416   ;;  %v328_v12 = vshrl.u32 (!%p273_p2), %v327_v11, 7  ;;  %s2018_s9 = smov (!%p273_p2), 32   ;;  %s2019_s12 = smov (!%p273_p2), 8  }
   0x8   : > { %1834 = vmatprep.subr.bf16.mxu0 (!%p273_p2), %v2015_v1  ;;  %1868 = vmatprep.mubr.msk.bf16.mxu1 (!%p273_p2), %vm2837_vm0, %v2015_v1  ;;  %529 = vst.msk [vmem:[#allocation2] sm:$0xff] (!%p273_p2), %vm528_vm3, %v2017_v10  ;;  %530 = vst.msk [vmem:[#allocation2 + $0x30] sm:$0xff] (!%p273_p2), %vm528_vm3, %v2017_v10  ;;  %s2021_s14 = smov (!%p273_p2), 16   ;;  %s2023_s21 = smov (!%p273_p2), 48  }
   0x9   : > { %v2132_v13 = vmul.u32.u64.low (!%p273_p2), 3435973837, %v328_v12  ;;  %v2133_v14 = vmul.u32.u64.high 3435973837, %v328_v12, %v2132_v13  ;;  %v329_v15 = vadd.s32 (!%p273_p2), 8, %v328_v12  ;;  %v330_v16 = vadd.s32 (!%p273_p2), 16, %v328_v12  ;;  %s2024_s22 = smov (!%p273_p2), 64   ;;  %s2025_s23 = smov (!%p273_p2), 40  }
   0xa   : > { %v331_v17 = vadd.s32 (!%p273_p2), 24, %v328_v12  ;;  %v332_v25 = vadd.s32 (!%p273_p2), 32, %v328_v12  ;;  %v333_v26 = vadd.s32 (!%p273_p2), 40, %v328_v12  ;;  %v2154_v36 = vadd.s32 (!%p273_p2), 48, %v328_v12 }
   0xb   : > { %1835 = vmatpush3.bf16.msra.mxu0 (!%p273_p2), %v1990_v2  ;;  %v2135_v18 = vmul.u32.u64.low (!%p273_p2), 3435973837, %v329_v15  ;;  %v2136_v19 = vmul.u32.u64.high 3435973837, %v329_v15, %v2135_v18  ;;  %v2138_v20 = vmul.u32.u64.low (!%p273_p2), 3435973837, %v330_v16  ;;  %v2139_v21 = vmul.u32.u64.high 3435973837, %v330_v16, %v2138_v20 }
   0xc   : > { %1836 = vmatprep.subr.bf16.mxu0 (!%p273_p2), %v2015_v1  ;;  %v344_v22 = vshrl.u32 (!%p273_p2), %v2133_v14, 3  ;;  %v2142_v23 = vmul.u32.u64.low (!%p273_p2), 3435973837, %v331_v17  ;;  %v2143_v24 = vmul.u32.u64.high 3435973837, %v331_v17, %v2142_v23  ;;  %v2156_v38 = vadd.s32 (!%p273_p2), 56, %v328_v12 }
   0xd   : > { %s2955_s28 = smov (!%p311_p3, %s1742_s28), 1  ;;  %v2145_v28 = vmul.u32.u64.low 3435973837, %v332_v25  ;;  %v2146_v29 = vmul.u32.u64.high 3435973837, %v332_v25, %v2145_v28  ;;  %v355_v30 = vshrl.u32 %v2136_v19, 3  ;;  %v366_v33 = vshrl.u32 %v2139_v21, 3 }
   0xe   : > { %s1948_s13 = smul.u32 40, %s2955_s28  ;;  %v345_v27 = vmul.u32 10, %v344_v22  ;;  %v2149_v31 = vmul.u32.u64.low 3435973837, %v333_v26  ;;  %v2150_v32 = vmul.u32.u64.high 3435973837, %v333_v26, %v2149_v31  ;;  %v377_v35 = vshrl.u32 %v2143_v24, 3 }
   0xf   : > { %1837 = vmatpush3.bf16.msra.mxu0 %v621_v4  ;;  %s1949_s17 = smul.u32 56, %s2955_s28  ;;  %v356_v37 = vmul.u32 10, %v355_v30  ;;  %v367_v39 = vmul.u32 10, %v366_v33  ;;  %v388_v41 = vshrl.u32 %v2146_v29, 3  ;;  %v2168_v49 = vadd.s32 64, %v328_v12 }
  0x10   : > { %s315_s16 = scalar_lea.vmem %s2827_s0, %s1948_s13  ;;  %1858 = vmatprep.subr.bf16.mxu0 %v2015_v1  ;;  %v346_v34 = vsub.s32 %v328_v12, %v345_v27  ;;  %v378_v40 = vmul.u32 10, %v377_v35  ;;  %v2160_v42 = vmul.u32.u64.low 3435973837, %v2154_v36  ;;  %v2161_v43 = vmul.u32.u64.high 3435973837, %v2154_v36, %v2160_v42  ;;  %v2206_v22 = vld [vmem:[#allocation2] sm:$0x80]  ;;  %s2278_s29 = scalar_lea.vmem %s2828_s1, %s1948_s13 }
  0x11   : > { %v1992_v5 = vld [vmem:[%s315_s16] sm:$0xff]   ;;  %v1993_v6 = vld [vmem:[%s315_s16 + $0x8] sm:$0xff]   ;;  %v1994_v7 = vld [vmem:[%s315_s16 + $0x10] sm:$0xff]   ;;  %s2122_s20 = scalar_lea.vmem %s2835_s8, %s1949_s17  ;;  %v357_v44 = vsub.s32 %v329_v15, %v356_v37  ;;  %v399_v45 = vshrl.u32 %v2150_v32, 3  ;;  %v2165_v46 = vmul.u32.u64.low 3435973837, %v2156_v38  ;;  %v2166_v47 = vmul.u32.u64.high 3435973837, %v2156_v38, %v2165_v46 }
  0x12   : > { %1839 = vmatmul.mubr.msk.bf16.vlgmr.msra.gmra.mrb[0].mxu0 %vm603_vm2, %v1992_v5  ;;  %v1995_v8 = vld [vmem:[%s315_s16 + $0x18] sm:$0xff]   ;;  %v1996_v9 = vld [vmem:[%s315_s16 + $0x20] sm:$0xff]   ;;  %1671 = vst.msk [vmem:[%s2122_s20] sm:$0xf] %vm2836_vm4, %v2017_v10  ;;  %1672 = vst.msk [vmem:[%s2122_s20 + $0x4] sm:$0xf] %vm2836_vm4, %v2017_v10  ;;  %v368_v48 = vsub.s32 %v330_v16, %v367_v39  ;;  %v379_v51 = vsub.s32 %v331_v17, %v378_v40 }
  0x13   : > { %1842 = vmatprep.mubr.msk.bf16.mxu0 %vm2837_vm0, %v2015_v1  ;;  %1673 = vst.msk [vmem:[%s2122_s20 + $0x30] sm:$0xf] %vm2836_vm4, %v2017_v10  ;;  %1674 = vst.msk [vmem:[%s2122_s20 + $0x34] sm:$0xf] %vm2836_vm4, %v2017_v10  ;;  %vm448_vm5 = vcmp.ne.s32.totalorder %v346_v34, 0  ;;  %vm458_vm6 = vcmp.lt.s32.totalorder %v346_v34, 0 }
  0x14   : > { %v478_v50 = vadd.s32 10, %v346_v34  ;;  %vm468_vm7 = vmand %vm458_vm6, %vm448_vm5  ;;  %v389_v52 = vmul.u32 10, %v388_v41  ;;  %vm449_vm8 = vcmp.ne.s32.totalorder %v357_v44, 0  ;;  %vm459_vm9 = vcmp.lt.s32.totalorder %v357_v44, 0  ;;  %v2212_v27 = vld [vmem:[#allocation2] sm:$0xfc] }
  0x15   : > { %v400_v53 = vmul.u32 10, %v399_v45  ;;  %vm450_vm10 = vcmp.ne.s32.totalorder %v368_v48, 0  ;;  %vm460_vm11 = vcmp.lt.s32.totalorder %v368_v48, 0  ;;  %v479_v57 = vadd.s32 10, %v357_v44  ;;  %vm469_vm12 = vmand %vm459_vm9, %vm449_vm8  ;;  %s2020_s13 = smov 24   ;;  %s2022_s17 = smov 56  }
  0x16   : > { %v2171_v54 = vmul.u32.u64.low 3435973837, %v2168_v49  ;;  %v2172_v55 = vmul.u32.u64.high 3435973837, %v2168_v49, %v2171_v54  ;;  %v488_v56 = vsel %vm468_vm7, %v478_v50, %v346_v34  ;;  %v480_v58 = vadd.s32 10, %v368_v48  ;;  %vm470_vm15 = vmand %vm460_vm11, %vm450_vm10 }
  0x17   : > { %v2174_v59 = vadd.s32 72, %v328_v12  ;;  %vm451_vm13 = vcmp.ne.s32.totalorder %v379_v51, 0  ;;  %vm461_vm14 = vcmp.lt.s32.totalorder %v379_v51, 0  ;;  %v390_v60 = vsub.s32 %v332_v25, %v389_v52  ;;  %v2187_v12 = vld [vmem:[#allocation2] sm:$0xf8] }
  0x18   : > { %v410_v61 = vshrl.u32 %v2161_v43, 3  ;;  %v401_v62 = vsub.s32 %v333_v26, %v400_v53  ;;  %v421_v63 = vshrl.u32 %v2166_v47, 3  ;;  %v481_v0 = vadd.s32 10, %v379_v51  ;;  %vm471_vm5 = vmand %vm461_vm14, %vm451_vm13  ;;  %v706_v54 = vld [vmem:[%s2833_s6] sm:$0x3] }
  0x19   : > { %v489_v2 = vsel %vm469_vm12, %v479_v57, %v357_v44  ;;  %v2179_v3 = vmul.u32.u64.low 3435973837, %v2174_v59  ;;  %v2180_v4 = vmul.u32.u64.high 3435973837, %v2174_v59, %v2179_v3  ;;  %v490_v5 = vsel %vm470_vm15, %v480_v58, %v368_v48  ;;  %v1997_v58 = vld [vmem:[%s2278_s29 + $0x10] sm:$0xff]  }
  0x1a   : > { %1843 = vmatmul.mubr.msk.bf16.gmra.mrb[4].mxu0 %vm603_vm2, %v1993_v6  ;;  %vm452_vm6 = vcmp.ne.s32.totalorder %v390_v60, 0  ;;  %vm462_vm7 = vcmp.lt.s32.totalorder %v390_v60, 0  ;;  %v411_v6 = vmul.u32 10, %v410_v61  ;;  %vm508_vm8 = vcmp.le.s32.totalorder %v488_v56, 8 }
  0x1b   : > { %1846 = vmatprep.mubr.msk.bf16.mxu0 %vm2837_vm0, %v2015_v1  ;;  %vm453_vm9 = vcmp.ne.s32.totalorder %v401_v62, 0  ;;  %vm463_vm10 = vcmp.lt.s32.totalorder %v401_v62, 0  ;;  %vm499_vm11 = vcmp.ge.s32.totalorder %v489_v2, 1  ;;  %v491_v10 = vsel %vm471_vm5, %v481_v0, %v379_v51  ;;  %vm2192_vm14 = vmand %vm462_vm7, %vm452_vm6 }
  0x1c   : > { %v482_v11 = vadd.s32 10, %v390_v60  ;;  %v432_v13 = vshrl.u32 %v2172_v55, 3  ;;  %vm509_vm12 = vcmp.le.s32.totalorder %v489_v2, 8  ;;  %vm500_vm13 = vcmp.ge.s32.totalorder %v490_v5, 1  ;;  %vm2199_vm5 = vmand %vm463_vm10, %vm453_vm9 }
  0x1d   : > { %v483_v16 = vadd.s32 10, %v401_v62  ;;  %vm510_vm15 = vcmp.le.s32.totalorder %v490_v5, 8  ;;  %v2204_v21 = vsub.s32 %v2154_v36, %v411_v6  ;;  %vm501_vm6 = vcmp.ge.s32.totalorder %v491_v10, 1  ;;  %vm2227_vm10 = vmand %vm499_vm11, %vm509_vm12 }
  0x1e   : > { %vm511_vm7 = vcmp.le.s32.totalorder %v491_v10, 8  ;;  %v954_v25 = vrot.slane %v2187_v12, 3  ;;  %v2223_v32 = vsel %vm2192_vm14, %v482_v11, %v390_v60  ;;  %v433_v33 = vmul.u32 10, %v432_v13  ;;  %vm2253_vm14 = vmand %vm500_vm13, %vm510_vm15  ;;  %v1998_v10 = vld [vmem:[%s2831_s4] sm:$0xff]   ;;  %v2000_v12 = vld [vmem:[%s2831_s4 + $0x8] sm:$0xff]  }
  0x1f   : > { %v2233_v35 = vsel %vm2199_vm5, %v483_v16, %v401_v62  ;;  %v1075_v36 = vshrl.u32 %v2206_v22, 16  ;;  %v879_v41 = vshrl.u32 %v2212_v27, 16  ;;  %v484_v42 = vadd.s32 10, %v2204_v21 }
  0x20   : > { %vm512_vm4 = vcmp.le.s32.totalorder %v2223_v32, 8  ;;  %v434_v47 = vsub.s32 %v2168_v49, %v433_v33  ;;  %v882_v53 = vshll.u32 %v2212_v27, 16 }
  0x22   : > { %1847 = vmatmul.mubr.msk.bf16.gmra.mrb[8].mxu0 %vm603_vm2, %v1994_v7  ;;  %v986_v7 = vld [vmem:[#allocation2] sm:$0xf8]  ;;  %vm456_vm15 = vcmp.ne.s32.totalorder %v434_v47, 0  ;;  %vm466_vm5 = vcmp.lt.s32.totalorder %v434_v47, 0  ;;  %v486_v3 = vadd.s32 10, %v434_v47 }
  0x23   : > { %1850 = vmatprep.mubr.msk.bf16.mxu0 %vm2837_vm0, %v2015_v1  ;;  %v994_v17 = vshrl.u32 %v986_v7, 16  ;;  %v997_v23 = vshll.u32 %v986_v7, 16 }
  0x25   : > { %v2236_v37 = vrot.slane %v994_v17, 3  ;;  %v2240_v40 = vrot.slane %v997_v23, 4 }
  0x2a   : > { %1851 = vmatmul.mubr.msk.bf16.gmra.mrb[12].mxu0 %vm603_vm2, %v1995_v8  ;;  %v2185_v8 = vld [vmem:[%s2830_s3] ss:$0 sm:$0xff] }
  0x2b   : > { %1854 = vmatprep.mubr.msk.bf16.mxu0 %vm2837_vm0, %v2015_v1 }
  0x32   : > { %1855 = vmatmul.mubr.msk.bf16.gmra.mrb[16].mxu0 %vm603_vm2, %v1996_v9  ;;  %vm498_vm2 = vcmp.ge.s32.totalorder %v488_v56, 1  ;;  %v422_v9 = vmul.u32 10, %v421_v63  ;;  %v756_v56 = vsel %vm619_vm1, %v706_v54, 0  ;;  %vm2840_vm1 = vsmask.f32 256 }
  0x33   : > { %1860 = vmatprep.mubr.msk.bf16.mxu0 %vm2837_vm0, %v2015_v1  ;;  %vm2216_vm9 = vmand %vm498_vm2, %vm508_vm8  ;;  %vm454_vm2 = vcmp.ne.s32.totalorder %v2204_v21, 0  ;;  %vm464_vm8 = vcmp.lt.s32.totalorder %v2204_v21, 0  ;;  %1911 = vmatpush3.bf16.msra.mxu1 %v756_v56 }
  0x34   : > { %v2210_v26 = vsub.s32 %v2156_v38, %v422_v9  ;;  %v443_v38 = vshrl.u32 %v2180_v4, 3  ;;  %vm2263_vm0 = vmand %vm501_vm6, %vm511_vm7  ;;  %vm2839_vm6 = vcmask 31744   ;;  %1859 = vmatpush3.bf16.msra.mxu0 %v756_v56  ;;  %1880 = vmatprep.subr.bf16.mxu1 %v2015_v1  ;;  %v2301_v4 = vrot.slane %v1075_v36, 7 }
  0x35   : > { %vm474_vm13 = vmand %vm464_vm8, %vm454_vm2  ;;  %v2317_v9 = vrot.slane %v879_v41, 2 }
  0x36   : > { %vm455_vm11 = vcmp.ne.s32.totalorder %v2210_v26, 0  ;;  %vm465_vm12 = vcmp.lt.s32.totalorder %v2210_v26, 0  ;;  %v485_v46 = vadd.s32 10, %v2210_v26  ;;  %v444_v52 = vmul.u32 10, %v443_v38  ;;  %1869 = vmatmul.mubr.msk.bf16.vlgmr.msra.gmra.mrb[0].mxu1 %vm2839_vm6, %v1997_v58  ;;  %vm2306_vm8 = vmand %vm466_vm5, %vm456_vm15 }
  0x37   : > { %vm475_vm7 = vmand %vm465_vm12, %vm455_vm11  ;;  %v2295_v63 = vsel %vm474_vm13, %v484_v42, %v2204_v21  ;;  %vm2865_vm11 = vmmov 0   ;;  %v2334_v20 = vsel %vm2306_vm8, %v486_v3, %v434_v47  ;;  %1881 = vmatpush3.bf16.msra.mxu1 %v1998_v10  ;;  %v1999_v21 = vld [vmem:[%s2278_s29 + $0x18] sm:$0xff]   ;;  %vm2866_vm5 = vcmp.ge.s32.totalorder %v2223_v32, 1 }
  0x38   : > { %v2298_v0 = vsub.s32 %v2174_v59, %v444_v52  ;;  %v2304_v5 = vsel %vm475_vm7, %v485_v46, %v2210_v26  ;;  %1872 = vmatprep.mubr.msk.bf16.mxu1 %vm2865_vm11, %v2015_v1  ;;  %vm2343_vm2 = vmand %vm2866_vm5, %vm512_vm4  ;;  %1882 = vmatprep.subr.bf16.mxu1 %v2015_v1  ;;  %vm2869_vm4 = vcmp.le.s32.totalorder %v2233_v35, 8  ;;  %vm2870_vm8 = vcmp.ge.s32.totalorder %v2233_v35, 1 }
  0x39   : > { %vm505_vm15 = vcmp.ge.s32.totalorder %v2304_v5, 1  ;;  %vm2362_vm5 = vmand %vm2870_vm8, %vm2869_vm4  ;;  %vm2873_vm7 = vcmask 1044480   ;;  %vm2841_vm8 = vsmask.f32 5376 }
  0x3a   : > { %vm457_vm13 = vcmp.ne.s32.totalorder %v2298_v0, 0  ;;  %vm467_vm12 = vcmp.lt.s32.totalorder %v2298_v0, 0 }
  0x3b   : > { %vm2379_vm4 = vmand %vm467_vm12, %vm457_vm13  ;;  %vm515_vm12 = vcmp.le.s32.totalorder %v2304_v5, 8  ;;  %1883 = vmatpush3.bf16.msra.mxu1 %v2000_v12 }
  0x3c   : > { %1884 = vmatprep.subr.bf16.mxu1 %v2015_v1 }
  0x3e   : > { %1873 = vmatmul.mubr.msk.bf16.gmra.mrb[4].mxu1 %vm2839_vm6, %v1999_v21  ;;  %vm2876_vm6 = vsmask.f32 4352 }
  0x3f   : > { %1876 = vmatprep.mubr.msk.bf16.mxu1 %vm2865_vm11, %v2015_v1 }
  0xe5   : > { %v657_v14 = vpop.f32.mrb[0].mxu0 }
  0xe6   : > { %v658_v18 = vadd.f32 %v2185_v8, %v657_v14  ;;  %v1840_v19 = vpop.f32.mrb[1].mxu0  ;;  %v2324_v14 = vrot.slane %v882_v53, 3 }
  0xe7   : > { %v660_v24 = vpop.f32.mrb[2].mxu0 }
  0xe8   : > { %v696_v29 = vmax.f32 %v658_v18, 0.0  ;;  %v661_v30 = vadd.f32 %v2185_v8, %v660_v24  ;;  %v1841_v31 = vpop.f32.mrb[3].mxu0  ;;  %v1000_v18 = vor.u32 %v2240_v40, %v2236_v37  ;;  %v885_v52 = vor.u32 %v2324_v14, %v2317_v9 }
  0xea   : > { %v697_v39 = vmax.f32 %v661_v30, 0.0  ;;  %v851_v43 = vsel %vm2216_vm9, %v696_v29, 0.0  ;;  %v487_v29 = vadd.s32 10, %v2298_v0 }
  0xec   : > { %v852_v44 = vsel %vm2227_vm10, %v697_v39, 0.0 }
  0xed   : > { %v861_v48 = vpack.c.bf16 %v852_v44, %v851_v43  ;;  %v665_v50 = vpop.f32.mrb[4].mxu0 }
  0xee   : > { %v666_v49 = vadd.f32 %v2185_v8, %v665_v50  ;;  %v1844_v55 = vpop.f32.mrb[5].mxu0 }
  0xef   : > { %866 = vst.msk [vmem:[#allocation2 + $0x8] sm:$0xff] %vm528_vm3, %v861_v48  ;;  %v668_v57 = vpop.f32.mrb[6].mxu0 }
  0xf0   : > { %v698_v60 = vmax.f32 %v666_v49, 0.0  ;;  %v669_v61 = vadd.f32 %v2185_v8, %v668_v57  ;;  %v1845_v62 = vpop.f32.mrb[7].mxu0  ;;  %v2411_v49 = vsel %vm2379_vm4, %v487_v29, %v2298_v0  ;;  %vm2842_vm4 = vsmask.f32 2304  ;;  %v2002_v29 = vld [vmem:[%s2278_s29 + $0x20] sm:$0xff]  }
  0xf2   : > { %v699_v2 = vmax.f32 %v669_v61, 0.0  ;;  %v853_v59 = vsel %vm2253_vm14, %v698_v60, 0.0 }
  0xf4   : > { %v854_v7 = vsel %vm2263_vm0, %v699_v2, 0.0 }
  0xf5   : > { %v862_v11 = vpack.c.bf16 %v854_v7, %v853_v59  ;;  %v673_v13 = vpop.f32.mrb[8].mxu0 }
  0xf6   : > { %v674_v15 = vadd.f32 %v2185_v8, %v673_v13  ;;  %v1848_v16 = vpop.f32.mrb[9].mxu0  ;;  %v2327_v17 = vld [vmem:[#allocation2 + $0x8] sm:$0xff] }
  0xf7   : > { %v1242_v19 = vld [vmem:[#allocation2 + $0x8] sm:$0xf0]  ;;  %867 = vst.msk [vmem:[#allocation2 + $0x10] sm:$0xff] %vm528_vm3, %v862_v11  ;;  %1149 = vrot.lane.b32.xlu1 %v2327_v17, %s2018_s9  ;;  %v676_v23 = vpop.f32.mrb[10].mxu0  ;;  %v955_v24 = vrot.slane %v2327_v17, 3  ;;  %v2351_v26 = vshrl.u32 %v2327_v17, 16 }
  0xf8   : > { %v2354_v27 = vshll.u32 %v2327_v17, 16  ;;  %v700_v30 = vmax.f32 %v674_v15, 0.0  ;;  %v677_v32 = vadd.f32 %v2185_v8, %v676_v23  ;;  %v1849_v33 = vpop.f32.mrb[11].mxu0  ;;  %v1250_v36 = vshrl.u32 %v1242_v19, 16  ;;  %v1323_v41 = vld [vmem:[#allocation2 + $0x8] sm:$0xe0] }
  0xf9   : > { %v1253_v37 = vshll.u32 %v1242_v19, 16  ;;  %v956_v38 = vsel %vm2873_vm7, %v954_v25, %v955_v24  ;;  %v1081_v39 = vrot.slane %v2351_v26, 7  ;;  %v1004_v40 = vrot.slane %v2351_v26, 3  ;;  %v1368_v47 = vld [vmem:[#allocation2 + $0x8] sm:$0xe0]  ;;  %v2001_v23 = vld [vmem:[%s2831_s4 + $0x10] sm:$0xff]  }
  0xfa   : > { %v1007_v35 = vrot.slane %v2354_v27, 4  ;;  %v855_v25 = vsel %vm2343_vm2, %v700_v30, 0.0  ;;  %v701_v43 = vmax.f32 %v677_v32, 0.0  ;;  %965 = vrot.lane.b32.xlu0 %v956_v38, %s2019_s12  ;;  %v2389_v44 = vrot.slane %v1250_v36, 4  ;;  %1885 = vmatpush3.bf16.msra.mxu1 %v2001_v23 }
  0xfb   : > { %v2391_v46 = vrot.slane %v1253_v37, 5  ;;  %v1084_v48 = vor.u32 %v2354_v27, %v1081_v39  ;;  %v1336_v54 = vrot.slane %v1323_v41, 5  ;;  %vm516_vm7 = vcmp.le.s32.totalorder %v2334_v20, 8  ;;  %1886 = vmatprep.subr.bf16.mxu1 %v2015_v1 }
  0xfc   : > { %v2397_v50 = vor.u32 %v1007_v35, %v1004_v40  ;;  %v856_v53 = vsel %vm2362_vm5, %v701_v43, 0.0  ;;  %v889_v55 = vrot.slane %v2351_v26, 2  ;;  %v1376_v61 = vshrl.u32 %v1368_v47, 16  ;;  %v2004_v43 = vld [vmem:[%s2278_s29] sm:$0xff]  }
  0xfd   : > { %v863_v56 = vpack.c.bf16 %v856_v53, %v855_v25  ;;  %v681_v57 = vpop.f32.mrb[12].mxu0  ;;  %v1085_v58 = vsel %vm2840_vm1, %v2301_v4, %v1084_v48  ;;  %v1256_v3 = vor.u32 %v2391_v46, %v2389_v44  ;;  %v1379_v4 = vshll.u32 %v1368_v47, 16  ;;  %v2003_v25 = vld [vmem:[%s2831_s4 + $0x18] sm:$0xff]  }
  0xfe   : > { %v1009_v60 = vsel %vm2876_vm6, %v1000_v18, %v2397_v50  ;;  %v682_v62 = vadd.f32 %v2185_v8, %v681_v57  ;;  %1118 = vrot.lane.b32.xlu1 %v1085_v58, %s2020_s13  ;;  %v1852_v0 = vpop.f32.mrb[13].mxu0  ;;  %v2422_v2 = vld [vmem:[#allocation2 + $0x10] sm:$0xff]  ;;  %v892_v6 = vrot.slane %v2354_v27, 3  ;;  %vm2877_vm6 = vcmp.le.s32.totalorder %v2295_v63, 8  ;;  %1887 = vmatpush3.bf16.msra.mxu1 %v2003_v25 }
  0xff   : > { %1046 = vrot.lane.b32.xlu0 %v1009_v60, %s2021_s14  ;;  %868 = vst.msk [vmem:[#allocation2 + $0x18] sm:$0xff] %vm528_vm3, %v863_v56  ;;  %vm2878_vm1 = vcmp.ge.s32.totalorder %v2295_v63, 1  ;;  %v684_v7 = vpop.f32.mrb[14].mxu0  ;;  %v1337_v10 = vrot.slane %v2422_v2, 5  ;;  %v2438_v11 = vshrl.u32 %v2422_v2, 16  ;;  %v2441_v13 = vshll.u32 %v2422_v2, 16  ;;  %1888 = vmatprep.subr.bf16.mxu1 %v2015_v1 }
 0x100   : > { %vm2432_vm13 = vmand %vm2878_vm1, %vm2877_vm6  ;;  %v957_v15 = vrot.slane %v2422_v2, 3  ;;  %v702_v16 = vmax.f32 %v682_v62, 0.0  ;;  %v685_v18 = vadd.f32 %v2185_v8, %v684_v7  ;;  %v1853_v19 = vpop.f32.mrb[15].mxu0  ;;  %v1182_v63 = vrot.slane %v2354_v27, 1 }
 0x101   : > { %v2446_v21 = vor.u32 %v892_v6, %v889_v55  ;;  %vm2456_vm1 = vmand %vm505_vm15, %vm515_vm12  ;;  %v2881_v30 = vmov 0  ;;  %vm2883_vm6 = vcmask 1042432   ;;  %v1260_v27 = vrot.slane %v2438_v11, 4 }
 0x102   : > { %v2882_v30 = vsel %vm2456_vm1, 4294967295, %v2881_v30  ;;  %v1338_v32 = vsel %vm2883_vm6, %v1336_v54, %v1337_v10  ;;  %v1263_v33 = vrot.slane %v2441_v13, 5  ;;  %v1378_v36 = vrot.slane %v1376_v61, 5  ;;  %1151 = vrot.lane.b32.xlu1 %v2422_v2, %s2018_s9 }
 0x103   : > { %v857_v37 = vsel %vm2432_vm13, %v702_v16, 0.0  ;;  %v703_v38 = vmax.f32 %v685_v18, 0.0  ;;  %1347 = vrot.lane.b32.xlu0 %v1338_v32, %s2022_s17  ;;  %v1386_v5 = vrot.slane %v2438_v11, 5  ;;  %v1389_v40 = vrot.slane %v2441_v13, 6 }
 0x104   : > { %v2472_v35 = vor.u32 %v1263_v33, %v1260_v27  ;;  %vm2884_vm15 = vcmask 1044480   ;;  %v1381_v42 = vrot.slane %v1379_v4, 6  ;;  %v1187_v12 = vrot.slane %v2441_v13, 1 }
 0x105   : > { %v958_v41 = vsel %vm2884_vm15, %v955_v24, %v957_v15  ;;  %v858_v44 = vsel %vm2456_vm1, %v703_v38, 0.0  ;;  %v1013_v46 = vrot.slane %v2438_v11, 3  ;;  %v1016_v47 = vrot.slane %v2441_v13, 4  ;;  %v689_v53 = vpop.f32.mrb[16].mxu0 }
 0x106   : > { %v894_v17 = vsel %vm2841_vm8, %v885_v52, %v2446_v21  ;;  %vm2885_vm12 = vcmask 31744   ;;  %v864_v24 = vpack.c.bf16 %v858_v44, %v857_v37  ;;  %vm2886_vm6 = vsmask.f32 3328  ;;  %v1856_v52 = vpop.f32.mrb[17].mxu0  ;;  %v2508_v56 = vld [vmem:[#allocation2 + $0x18] sm:$0xff] }
 0x107   : > { %1877 = vmatmul.mubr.msk.bf16.gmra.mrb[8].mxu1 %vm2885_vm12, %v2002_v29  ;;  %v1265_v48 = vsel %vm2886_vm6, %v1256_v3, %v2472_v35  ;;  %v2497_v54 = vor.u32 %v1389_v40, %v1386_v5  ;;  %v1089_v55 = vrot.slane %v2438_v11, 7  ;;  %936 = vst.msk [vmem:[#allocation3] sm:$0xff] %vm528_vm3, %v894_v17  ;;  %vm2887_vm15 = vmmov %vm2885_vm12  ;;  %967 = vrot.lane.b32.xlu0 %v958_v41, %s2019_s12  ;;  %vm517_vm6 = vcmp.le.s32.totalorder %v2411_v49, 8  ;;  %v692_v60 = vpop.f32.mrb[18].mxu0 }
 0x108   : > { %1861 = vmatmul.mubr.msk.bf16.vlgmr.msra.gmra.mrb[20].mxu0 %vm2887_vm15, %v2004_v43  ;;  %1302 = vrot.lane.b32.xlu1 %v1265_v48, %s2023_s21  ;;  %v690_v9 = vadd.f32 %v2185_v8, %v689_v53  ;;  %v1183_v14 = vor.u32 %v1182_v63, %v2351_v26  ;;  %869 = vst.msk [vmem:[#allocation2 + $0x20] sm:$0xff] %vm528_vm3, %v864_v24  ;;  %vm2888_vm15 = vcmp.ge.s32.totalorder %v2334_v20, 1  ;;  %v2889_v57 = vmov 0  ;;  %v1857_v4 = vpop.f32.mrb[19].mxu0  ;;  %v2005_v53 = vld [vmem:[%s2831_s4 + $0x20] ss:$0 sps:$4 sm:$0xff]  }
 0x109   : > { %vm2515_vm8 = vmand %vm2888_vm15, %vm516_vm7  ;;  %v1382_v58 = vor.u32 %v1381_v42, %v1378_v36  ;;  %1890 = vmatprep.mubr.msk.bf16.mxu1 %vm2865_vm11, %v2015_v1  ;;  %vm2891_vm12 = vsmask.f32 7424  ;;  %v693_v0 = vadd.f32 %v2185_v8, %v692_v60  ;;  %v1017_v3 = vor.u32 %v1016_v47, %v1013_v46  ;;  %1864 = vmatprep.mubr.msk.bf16.mxu0 %vm2865_vm11, %v2015_v1  ;;  %v2006_v42 = vld [vmem:[%s2278_s29 + $0x8] sm:$0xff]  }
 0x10a   : > { %v2890_v57 = vsel %vm2515_vm8, 4294967295, %v2889_v57  ;;  %v704_v61 = vmax.f32 %v690_v9, 0.0  ;;  %v1188_v62 = vsel %vm2891_vm12, %v1183_v14, %v1187_v12  ;;  %vm2892_vm7 = vcmp.ge.s32.totalorder %v2411_v49, 1 }
 0x10b   : > { %v1391_v20 = vsel %vm2842_vm4, %v1382_v58, %v2497_v54  ;;  %vm2534_vm15 = vmand %vm2892_vm7, %vm517_vm6  ;;  %v2893_v6 = vmov 0  ;;  %v1092_v8 = vor.u32 %v2441_v13, %v1089_v55  ;;  %v2542_v7 = vshrl.u32 %v2508_v56, 16  ;;  %1221 = vrot.lane.b32.xlu0 %v1188_v62, %s2025_s23 }
 0x10c   : > { %v2894_v6 = vsel %vm2534_vm15, 4294967295, %v2893_v6  ;;  %v2545_v16 = vshll.u32 %v2508_v56, 16  ;;  %v859_v18 = vsel %vm2515_vm8, %v704_v61, 0.0  ;;  %1428 = vrot.lane.b32.xlu1 %v1391_v20, %s2024_s22  ;;  %v705_v49 = vmax.f32 %v693_v0, 0.0 }
 0x10d   : > { %vm2895_vm12 = vsmask.f32 4352  ;;  %v1339_v23 = vrot.slane %v2508_v56, 5  ;;  %v898_v29 = vrot.slane %v2438_v11, 2  ;;  %vm2896_vm6 = vsmask.f32 256 }
 0x10e   : > { %v860_v19 = vsel %vm2534_vm15, %v705_v49, 0.0  ;;  %v1018_v63 = vsel %vm2895_vm12, %v2397_v50, %v1017_v3  ;;  %v1093_v27 = vsel %vm2896_vm6, %v1081_v39, %v1092_v8  ;;  %v1269_v33 = vrot.slane %v2542_v7, 4 }
 0x10f   : > { %v865_v32 = vpack.c.bf16 %v860_v19, %v859_v18  ;;  %v1272_v36 = vrot.slane %v2545_v16, 5  ;;  %1120 = vrot.lane.b32.xlu0 %v1093_v27, %s2020_s13  ;;  %v901_v50 = vrot.slane %v2441_v13, 3  ;;  %v959_v37 = vrot.slane %v2508_v56, 3  ;;  %v2602_v24 = vld [vmem:[#allocation2 + $0x20] sm:$0xff] }
 0x110   : > { %1048 = vrot.lane.b32.xlu1 %v1018_v63, %s2021_s14  ;;  %vm2897_vm7 = vcmask 1042432   ;;  %v1395_v5 = vrot.slane %v2542_v7, 5  ;;  %v1398_v40 = vrot.slane %v2545_v16, 6  ;;  %vm2898_vm12 = vsmask.f32 5376 }
 0x111   : > { %870 = vst.msk [vmem:[#allocation2 + $0x28] sm:$0xff] %vm528_vm3, %v865_v32  ;;  %v2567_v38 = vor.u32 %v901_v50, %v898_v29  ;;  %v1340_v26 = vsel %vm2897_vm7, %v1337_v10, %v1339_v23  ;;  %v2572_v39 = vor.u32 %v1272_v36, %v1269_v33  ;;  %v1195_v25 = vrot.slane %v2545_v16, 1 }
 0x112   : > { %v1022_v10 = vrot.slane %v2542_v7, 3  ;;  %v1025_v43 = vrot.slane %v2545_v16, 4  ;;  %vm2899_vm6 = vsmask.f32 3328  ;;  %vm2900_vm7 = vcmask 1044480  }
 0x113   : > { %1349 = vrot.lane.b32.xlu0 %v1340_v26, %s2022_s17  ;;  %v903_v41 = vsel %vm2898_vm12, %v2446_v21, %v2567_v38  ;;  %v1274_v44 = vsel %vm2899_vm6, %v2472_v35, %v2572_v39  ;;  %v960_v46 = vsel %vm2900_vm7, %v957_v15, %v959_v37  ;;  %v2593_v47 = vor.u32 %v1398_v40, %v1395_v5 }
 0x114   : > { %1153 = vrot.lane.b32.xlu1 %v2508_v56, %s2018_s9  ;;  %937 = vst.msk [vmem:[#allocation3 + $0x8] sm:$0xff] %vm528_vm3, %v903_v41  ;;  %v1097_v21 = vrot.slane %v2542_v7, 7  ;;  %vm2901_vm12 = vcmask 31744   ;;  %v1191_v17 = vor.u32 %v2438_v11, %v1187_v12  ;;  %vm2902_vm6 = vsmask.f32 7424 }
 0x115   : > { %1865 = vmatmul.mubr.msk.bf16.gmra.mrb[24].mxu0 %vm2901_vm12, %v2006_v42  ;;  %v2607_v15 = vor.u32 %v1025_v43, %v1022_v10  ;;  %v1400_v35 = vsel %vm2842_vm4, %v2497_v54, %v2593_v47  ;;  %v2616_v13 = vshrl.u32 %v2602_v24, 16  ;;  %v2619_v12 = vshll.u32 %v2602_v24, 16 }
 0x116   : > { %v1196_v2 = vsel %vm2902_vm6, %v1191_v17, %v1195_v25  ;;  %v1100_v48 = vor.u32 %v2545_v16, %v1097_v21  ;;  %v1341_v54 = vrot.slane %v2602_v24, 5  ;;  %vm2903_vm7 = vsmask.f32 4352 }
 0x117   : > { %969 = vrot.lane.b32.xlu0 %v960_v46, %s2019_s12  ;;  %v1027_v9 = vsel %vm2903_vm7, %v1017_v3, %v2607_v15  ;;  %vm2904_vm12 = vsmask.f32 256  ;;  %v1278_v52 = vrot.slane %v2616_v13, 4  ;;  %v1281_v56 = vrot.slane %v2619_v12, 5 }
 0x118   : > { %1304 = vrot.lane.b32.xlu1 %v1274_v44, %s2023_s21  ;;  %v1101_v14 = vsel %vm2904_vm12, %v1089_v55, %v1100_v48  ;;  %vm1513_vm6 = vcmask 1043456   ;;  %v876_v60 = vld [vmem:[#allocation2 + $0x28] sm:$0x7]  ;;  %vm2905_vm4 = vcmask 1042432   ;;  %v961_v62 = vrot.slane %v2602_v24, 3 }
 0x119   : > { %v1515_v58 = vsel %vm1513_vm6, %v2005_v53, 0  ;;  %v1342_v61 = vsel %vm2905_vm4, %v1339_v23, %v1341_v54  ;;  %v1404_v11 = vrot.slane %v2616_v13, 5  ;;  %v907_v55 = vrot.slane %v2542_v7, 2  ;;  %v991_v53 = vld [vmem:[#allocation2 + $0x28] sm:$0xf] }
 0x11a   : > { %1889 = vmatpush3.bf16.msra.mxu1 %v1515_v58  ;;  %v910_v0 = vrot.slane %v2545_v16, 3  ;;  %v916_v3 = vrot.slane %v2616_v13, 2  ;;  %v919_v4 = vrot.slane %v2619_v12, 3  ;;  %v2645_v20 = vor.u32 %v1281_v56, %v1278_v52  ;;  %v1247_v56 = vld [vmem:[#allocation2 + $0x30] sm:$0x1f] }
 0x11b   : > { %1223 = vrot.lane.b32.xlu0 %v1196_v2, %s2025_s23  ;;  %v1407_v8 = vrot.slane %v2619_v12, 6  ;;  %v923_v18 = vshrl.u32 %v876_v60, 16  ;;  %v926_v49 = vshll.u32 %v876_v60, 16  ;;  %vm2906_vm4 = vcmask 1044480   ;;  %v946_v2 = vld [vmem:[#allocation2 + $0x28] sm:$0x7] }
 0x11c   : > { %1430 = vrot.lane.b32.xlu1 %v1400_v35, %s2024_s22  ;;  %v911_v19 = vor.u32 %v910_v0, %v907_v55  ;;  %v920_v63 = vor.u32 %v919_v4, %v916_v3  ;;  %v962_v23 = vsel %vm2906_vm4, %v959_v37, %v961_v62  ;;  %v1203_v29 = vrot.slane %v2619_v12, 1  ;;  %v1175_v4 = vld [vmem:[#allocation2 + $0x30] sm:$0x1] }
 0x11d   : > { %v925_v32 = vrot.slane %v923_v18, 2  ;;  %v928_v27 = vrot.slane %v926_v49, 3  ;;  %v1031_v33 = vrot.slane %v2616_v13, 3  ;;  %v1034_v36 = vrot.slane %v2619_v12, 4 }
 0x11e   : > { %vm2907_vm7 = vsmask.f32 5376  ;;  %vm2909_vm6 = vsmask.f32 3328  ;;  %v1408_v40 = vor.u32 %v1407_v8, %v1404_v11  ;;  %v1105_v37 = vrot.slane %v2616_v13, 7 }
 0x11f   : > { %1122 = vrot.lane.b32.xlu0 %v1101_v14, %s2020_s13  ;;  %v912_v50 = vsel %vm2907_vm7, %v2567_v38, %v911_v19  ;;  %vm2908_vm12 = vmmov %vm2907_vm7  ;;  %v1283_v5 = vsel %vm2909_vm6, %v2572_v39, %v2645_v20  ;;  %v929_v41 = vor.u32 %v928_v27, %v925_v32  ;;  %v1199_v38 = vor.u32 %v2542_v7, %v1195_v25  ;;  %v2672_v39 = vld [vmem:[#allocation2 + $0x28] sm:$0xff] }
 0x120   : > { %1050 = vrot.lane.b32.xlu1 %v1027_v9, %s2021_s14  ;;  %v921_v26 = vsel %vm2908_vm12, %v911_v19, %v920_v63  ;;  %938 = vst.msk [vmem:[#allocation3 + $0x10] sm:$0xff] %vm528_vm3, %v912_v50  ;;  %vm2910_vm4 = vmmov %vm2907_vm7  ;;  %v1035_v10 = vor.u32 %v1034_v36, %v1031_v33  ;;  %vm2911_vm7 = vsmask.f32 2304  ;;  %vm2912_vm12 = vsmask.f32 7424 }
 0x121   : > { %939 = vst.msk [vmem:[#allocation3 + $0x18] sm:$0xff] %vm528_vm3, %v921_v26  ;;  %v930_v42 = vsel %vm2910_vm4, %v920_v63, %v929_v41  ;;  %v1409_v43 = vsel %vm2911_vm7, %v2593_v47, %v1408_v40  ;;  %v1204_v44 = vsel %vm2912_vm12, %v1199_v38, %v1203_v29  ;;  %v1108_v46 = vor.u32 %v2619_v12, %v1105_v37  ;;  %v1373_v19 = vld [vmem:[#allocation2 + $0x30] sm:$0x3f] }
 0x122   : > { %940 = vst.msk [vmem:[#allocation3 + $0x20] sm:$0xff] %vm528_vm3, %v930_v42  ;;  %v1288_v16 = vshll.u32 %v2672_v39, 16  ;;  %v1285_v25 = vshrl.u32 %v2672_v39, 16  ;;  %vm2913_vm6 = vsmask.f32 4352  ;;  %v1343_v35 = vrot.slane %v2672_v39, 5 }
 0x123   : > { %1351 = vrot.lane.b32.xlu0 %v1342_v61, %s2022_s17  ;;  %v1036_v17 = vsel %vm2913_vm6, %v2607_v15, %v1035_v10  ;;  %vm2914_vm3 = vsmask.f32 256  ;;  %v963_v9 = vrot.slane %v946_v2, 3  ;;  %v1038_v14 = vshrl.u32 %v991_v53, 16 }
 0x124   : > { %1155 = vrot.lane.b32.xlu1 %v2602_v24, %s2018_s9  ;;  %v1109_v47 = vsel %vm2914_vm3, %v1097_v21, %v1108_v46  ;;  %v1287_v48 = vrot.slane %v1285_v25, 4  ;;  %v1290_v12 = vrot.slane %v1288_v16, 5  ;;  %v1041_v52 = vshll.u32 %v991_v53, 16 }
 0x125   : > { %vm2915_vm4 = vcmask 1042432   ;;  %v1413_v58 = vrot.slane %v1285_v25, 5  ;;  %v1416_v21 = vrot.slane %v1288_v16, 6  ;;  %v1294_v60 = vshrl.u32 %v1247_v56, 16 }
 0x126   : > { %v1344_v15 = vsel %vm2915_vm4, %v1341_v54, %v1343_v35  ;;  %v1291_v7 = vor.u32 %v1290_v12, %v1287_v48  ;;  %v1297_v61 = vshll.u32 %v1247_v56, 16  ;;  %vm2916_vm7 = vcmask 1044480  }
 0x127   : > { %971 = vrot.lane.b32.xlu0 %v962_v23, %s2019_s12  ;;  %v964_v11 = vsel %vm2916_vm7, %v961_v62, %v963_v9  ;;  %v1207_v55 = vor.u32 %v2616_v13, %v1203_v29  ;;  %v1211_v0 = vrot.slane %v1288_v16, 1  ;;  %v1113_v3 = vrot.slane %v1285_v25, 7 }
 0x128   : > { %1306 = vrot.lane.b32.xlu1 %v1283_v5, %s2023_s21  ;;  %vm2917_vm12 = vsmask.f32 3328  ;;  %v1417_v8 = vor.u32 %v1416_v21, %v1413_v58  ;;  %v1040_v18 = vrot.slane %v1038_v14, 3  ;;  %v1043_v49 = vrot.slane %v1041_v52, 4 }
 0x129   : > { %v1292_v54 = vsel %vm2917_vm12, %v2645_v20, %v1291_v7  ;;  %v1217_v63 = vshll.u32 %v1175_v4, 16  ;;  %v1296_v24 = vrot.slane %v1294_v60, 4  ;;  %v1299_v23 = vrot.slane %v1297_v61, 5 }
 0x12a   : > { %v1420_v62 = vshrl.u32 %v1373_v19, 16  ;;  %v1423_v32 = vshll.u32 %v1373_v19, 16  ;;  %vm2918_vm6 = vsmask.f32 2304  ;;  %vm2919_vm3 = vsmask.f32 7424 }
 0x12b   : > { %1225 = vrot.lane.b32.xlu0 %v1204_v44, %s2025_s23  ;;  %v1418_v29 = vsel %vm2918_vm6, %v1408_v40, %v1417_v8  ;;  %v1212_v27 = vsel %vm2919_vm3, %v1207_v55, %v1211_v0  ;;  %v1044_v33 = vor.u32 %v1043_v49, %v1040_v18  ;;  %v1116_v36 = vor.u32 %v1288_v16, %v1113_v3  ;;  %v1328_v40 = vld [vmem:[#allocation2 + $0x30] sm:$0x1f]  ;;  %vm2922_vm6 = vmmov %vm2919_vm3 }
 0x12c   : > { %1432 = vrot.lane.b32.xlu1 %v1409_v43, %s2024_s22  ;;  %v1219_v20 = vrot.slane %v1217_v63, 1  ;;  %v1422_v50 = vrot.slane %v1420_v62, 5  ;;  %v1425_v26 = vrot.slane %v1423_v32, 6  ;;  %vm2920_vm4 = vsmask.f32 4352 }
 0x12d   : > { %v1045_v5 = vsel %vm2920_vm4, %v1035_v10, %v1044_v33  ;;  %vm2921_vm7 = vsmask.f32 256  ;;  %v1300_v38 = vor.u32 %v1299_v23, %v1296_v24  ;;  %v1215_v42 = vor.u32 %v1285_v25, %v1211_v0 }
 0x12e   : > { %v1117_v41 = vsel %vm2921_vm7, %v1105_v37, %v1116_v36  ;;  %v1426_v44 = vor.u32 %v1425_v26, %v1422_v50  ;;  %v1345_v46 = vrot.slane %v1328_v40, 5  ;;  %vm2923_vm3 = vsmask.f32 2304 }
 0x12f   : > { %1124 = vrot.lane.b32.xlu0 %v1109_v47, %s2020_s13  ;;  %v1220_v43 = vsel %vm2922_vm6, %v1215_v42, %v1219_v20  ;;  %vm2924_vm4 = vcmask 1042432   ;;  %vm2846_vm7 = vcmask 130112   ;;  %vm2848_vm6 = vcmask 261312  }
 0x130   : > { %1052 = vrot.lane.b32.xlu1 %v1036_v17, %s2021_s14  ;;  %v1427_v13 = vsel %vm2923_vm3, %v1417_v8, %v1426_v44  ;;  %v1346_v37 = vsel %vm2924_vm4, %v1343_v35, %v1345_v46  ;;  %vm1164_vm15 = vcmask 326912   ;;  %vm1236_vm3 = vcmask 392512  }
 0x131   : > { %vm2847_vm4 = vcmask 458112   ;;  %vm1362_vm8 = vcmask 523712   ;;  %vm1443_vm1 = vcmask 589312  }
 0x133   : > { %1353 = vrot.lane.b32.xlu0 %v1344_v15, %s2022_s17 }
 0x134   : > { %1157 = vrot.lane.b32.xlu1 %v2672_v39, %s2018_s9  ;;  %v1301_v39 = vsel %vm2917_vm12, %v1291_v7, %v1300_v38  ;;  %vm2850_vm12 = vcmask 195712  }
 0x137   : > { %973 = vrot.lane.b32.xlu0 %v964_v11, %s2019_s12 }
 0x138   : > { %1308 = vrot.lane.b32.xlu1 %v1292_v54, %s2023_s21 }
 0x13b   : > { %1227 = vrot.lane.b32.xlu0 %v1212_v27, %s2025_s23 }
 0x13c   : > { %1434 = vrot.lane.b32.xlu1 %v1418_v29, %s2024_s22 }
 0x13f   : > { %1126 = vrot.lane.b32.xlu0 %v1117_v41, %s2020_s13 }
 0x140   : > { %1054 = vrot.lane.b32.xlu1 %v1045_v5, %s2021_s14 }
 0x143   : > { %1229 = vrot.lane.b32.xlu0 %v1220_v43, %s2025_s23 }
 0x144   : > { %1310 = vrot.lane.b32.xlu1 %v1301_v39, %s2023_s21 }
 0x147   : > { %1355 = vrot.lane.b32.xlu0 %v1346_v37, %s2022_s17 }
 0x148   : > { %1436 = vrot.lane.b32.xlu1 %v1427_v13, %s2024_s22 }
 0x169   : > { %v1150_v10 = vpop.permute.xlu1 %1149 }
 0x16c   : > { %v966_v16 = vpop.permute.xlu0 %965 }
 0x16d   : > { %981 = vst.msk [vmem:[#allocation3] sm:$0xff] %vm2846_vm7, %v966_v16 }
 0x170   : > { %v1119_v25 = vpop.permute.xlu1 %1118 }
 0x171   : > { %v1047_v17 = vpop.permute.xlu0 %1046 }
 0x172   : > { %1062 = vst.msk [vmem:[#allocation3] sm:$0xff] %vm2850_vm12, %v1047_v17 }
 0x173   : > { %1134 = vst.msk [vmem:[#allocation3] sm:$0xff] %vm2848_vm6, %v1119_v25 }
 0x174   : > { %1165 = vst.msk [vmem:[#allocation3] sm:$0xff] %vm1164_vm15, %v1150_v10  ;;  %v1152_v47 = vpop.permute.xlu1 %1151  ;;  %v1764_v10 = vld [vmem:[%s2834_s7] ss:$0 sm:$0xff] }
 0x175   : > { %v1348_v2 = vpop.permute.xlu0 %1347 }
 0x179   : > { %v968_v48 = vpop.permute.xlu0 %967 }
 0x17a   : > { %v1303_v35 = vpop.permute.xlu1 %1302  ;;  %982 = vst.msk [vmem:[#allocation3 + $0x8] sm:$0xff] %vm2846_vm7, %v968_v48  ;;  %vm2849_vm7 = vcmask 588800  }
 0x17d   : > { %v1222_v53 = vpop.permute.xlu0 %1221 }
 0x17e   : > { %v1429_v12 = vpop.permute.xlu1 %1428  ;;  %1237 = vst.msk [vmem:[#allocation3] sm:$0xff] %vm1236_vm3, %v1222_v53 }
 0x17f   : > { %1318 = vst.msk [vmem:[#allocation3] sm:$0xff] %vm2847_vm4, %v1303_v35  ;;  %vm2925_vm4 = vcmask 130112  }
 0x180   : > { %1363 = vst.msk [vmem:[#allocation3] sm:$0xff] %vm1362_vm8, %v1348_v2 }
 0x181   : > { %1444 = vst.msk [vmem:[#allocation3] sm:$0xff] %vm1443_vm1, %v1429_v12  ;;  %v1121_v14 = vpop.permute.xlu0 %1120 }
 0x182   : > { %v1049_v9 = vpop.permute.xlu1 %1048 }
 0x183   : > { %1063 = vst.msk [vmem:[#allocation3 + $0x8] sm:$0xff] %vm2850_vm12, %v1049_v9 }
 0x184   : > { %1135 = vst.msk [vmem:[#allocation3 + $0x8] sm:$0xff] %vm2848_vm6, %v1121_v14  ;;  %vm2926_vm6 = vcmask 458112  }
 0x185   : > { %1166 = vst.msk [vmem:[#allocation3 + $0x8] sm:$0xff] %vm1164_vm15, %v1152_v47  ;;  %v1350_v52 = vpop.permute.xlu0 %1349 }
 0x186   : > { %v1154_v56 = vpop.permute.xlu1 %1153 }
 0x188   : > { %v1449_v15 = vld [vmem:[#allocation3] sm:$0xff] }
 0x189   : > { %1891 = vmatmul.mubr.msk.bf16.vlgmr.msra.gmra.mrb[12].mxu1 %vm2849_vm7, %v1449_v15  ;;  %v970_v58 = vpop.permute.xlu0 %969  ;;  %vm2927_vm7 = vcmask 261312  }
 0x18a   : > { %v1305_v7 = vpop.permute.xlu1 %1304  ;;  %983 = vst.msk [vmem:[#allocation3 + $0x10] sm:$0xff] %vm2925_vm4, %v970_v58  ;;  %1894 = vmatprep.mubr.msk.bf16.mxu1 %vm2865_vm11, %v2015_v1  ;;  %vm2928_vm4 = vcmask 588800  }
 0x18d   : > { %v1224_v60 = vpop.permute.xlu0 %1223 }
 0x18e   : > { %v1431_v21 = vpop.permute.xlu1 %1430  ;;  %1238 = vst.msk [vmem:[#allocation3 + $0x8] sm:$0xff] %vm1236_vm3, %v1224_v60 }
 0x18f   : > { %1319 = vst.msk [vmem:[#allocation3 + $0x8] sm:$0xff] %vm2926_vm6, %v1305_v7  ;;  %vm2929_vm6 = vcmask 130112  }
 0x190   : > { %1364 = vst.msk [vmem:[#allocation3 + $0x8] sm:$0xff] %vm1362_vm8, %v1350_v52 }
 0x191   : > { %1445 = vst.msk [vmem:[#allocation3 + $0x8] sm:$0xff] %vm1443_vm1, %v1431_v21  ;;  %v1123_v11 = vpop.permute.xlu0 %1122 }
 0x192   : > { %v1051_v61 = vpop.permute.xlu1 %1050 }
 0x193   : > { %1064 = vst.msk [vmem:[#allocation3 + $0x10] sm:$0xff] %vm2850_vm12, %v1051_v61  ;;  %vm2930_vm12 = vcmask 458112  }
 0x194   : > { %1136 = vst.msk [vmem:[#allocation3 + $0x10] sm:$0xff] %vm2927_vm7, %v1123_v11  ;;  %vm2931_vm7 = vcmask 195712  }
 0x195   : > { %1167 = vst.msk [vmem:[#allocation3 + $0x10] sm:$0xff] %vm1164_vm15, %v1154_v56  ;;  %v1352_v55 = vpop.permute.xlu0 %1351 }
 0x196   : > { %v1156_v0 = vpop.permute.xlu1 %1155 }
 0x198   : > { %v1450_v3 = vld [vmem:[#allocation3 + $0x8] sm:$0xff] }
 0x199   : > { %1895 = vmatmul.mubr.msk.bf16.gmra.mrb[16].mxu1 %vm2928_vm4, %v1450_v3  ;;  %v972_v54 = vpop.permute.xlu0 %971  ;;  %vm2932_vm4 = vcmask 261312  }
 0x19a   : > { %v1307_v4 = vpop.permute.xlu1 %1306  ;;  %984 = vst.msk [vmem:[#allocation3 + $0x18] sm:$0xff] %vm2929_vm6, %v972_v54  ;;  %1898 = vmatprep.mubr.msk.bf16.mxu1 %vm2865_vm11, %v2015_v1  ;;  %vm2933_vm6 = vcmask 588800  }
 0x19d   : > { %v1226_v18 = vpop.permute.xlu0 %1225 }
 0x19e   : > { %v1433_v8 = vpop.permute.xlu1 %1432  ;;  %1239 = vst.msk [vmem:[#allocation3 + $0x10] sm:$0xff] %vm1236_vm3, %v1226_v18 }
 0x19f   : > { %1320 = vst.msk [vmem:[#allocation3 + $0x10] sm:$0xff] %vm2930_vm12, %v1307_v4  ;;  %vm2934_vm12 = vcmask 130112  }
 0x1a0   : > { %1365 = vst.msk [vmem:[#allocation3 + $0x10] sm:$0xff] %vm1362_vm8, %v1352_v55 }
 0x1a1   : > { %1446 = vst.msk [vmem:[#allocation3 + $0x10] sm:$0xff] %vm1443_vm1, %v1433_v8  ;;  %v1125_v19 = vpop.permute.xlu0 %1124 }
 0x1a2   : > { %v1053_v49 = vpop.permute.xlu1 %1052 }
 0x1a3   : > { %1065 = vst.msk [vmem:[#allocation3 + $0x18] sm:$0xff] %vm2931_vm7, %v1053_v49  ;;  %vm2935_vm7 = vcmask 458112  }
 0x1a4   : > { %1137 = vst.msk [vmem:[#allocation3 + $0x18] sm:$0xff] %vm2932_vm4, %v1125_v19  ;;  %vm2936_vm4 = vcmask 195712  }
 0x1a5   : > { %1168 = vst.msk [vmem:[#allocation3 + $0x18] sm:$0xff] %vm1164_vm15, %v1156_v0  ;;  %v1354_v63 = vpop.permute.xlu0 %1353 }
 0x1a6   : > { %v1158_v24 = vpop.permute.xlu1 %1157 }
 0x1a8   : > { %v1451_v23 = vld [vmem:[#allocation3 + $0x10] sm:$0xff] }
 0x1a9   : > { %1899 = vmatmul.mubr.msk.bf16.gmra.mrb[0].mxu1 %vm2933_vm6, %v1451_v23  ;;  %v974_v32 = vpop.permute.xlu0 %973  ;;  %vm2937_vm6 = vcmask 261312  }
 0x1aa   : > { %v1309_v62 = vpop.permute.xlu1 %1308  ;;  %985 = vst.msk [vmem:[#allocation3 + $0x20] sm:$0xff] %vm2934_vm12, %v974_v32  ;;  %1902 = vmatprep.mubr.msk.bf16.mxu1 %vm2865_vm11, %v2015_v1  ;;  %vm2938_vm12 = vmmov %vm2935_vm7 }
 0x1ad   : > { %v1228_v27 = vpop.permute.xlu0 %1227 }
 0x1ae   : > { %v1435_v29 = vpop.permute.xlu1 %1434  ;;  %1240 = vst.msk [vmem:[#allocation3 + $0x18] sm:$0xff] %vm1236_vm3, %v1228_v27 }
 0x1af   : > { %1321 = vst.msk [vmem:[#allocation3 + $0x18] sm:$0xff] %vm2935_vm7, %v1309_v62  ;;  %vm2939_vm7 = vcmask 588800  }
 0x1b0   : > { %1366 = vst.msk [vmem:[#allocation3 + $0x18] sm:$0xff] %vm1362_vm8, %v1354_v63 }
 0x1b1   : > { %1447 = vst.msk [vmem:[#allocation3 + $0x18] sm:$0xff] %vm1443_vm1, %v1435_v29  ;;  %v1127_v36 = vpop.permute.xlu0 %1126 }
 0x1b2   : > { %v1055_v33 = vpop.permute.xlu1 %1054 }
 0x1b3   : > { %1066 = vst.msk [vmem:[#allocation3 + $0x20] sm:$0xff] %vm2936_vm4, %v1055_v33 }
 0x1b4   : > { %1138 = vst.msk [vmem:[#allocation3 + $0x20] sm:$0xff] %vm2937_vm6, %v1127_v36 }
 0x1b5   : > { %1169 = vst.msk [vmem:[#allocation3 + $0x20] sm:$0xff] %vm1164_vm15, %v1158_v24  ;;  %v1230_v50 = vpop.permute.xlu0 %1229  ;;  %vm2940_vm15 = vmmov %vm2939_vm7 }
 0x1b6   : > { %v1311_v20 = vpop.permute.xlu1 %1310  ;;  %1241 = vst.msk [vmem:[#allocation3 + $0x20] sm:$0xff] %vm1236_vm3, %v1230_v50  ;;  %vm2951_vm3 = vnez %v2894_v6 }
 0x1b7   : > { %1322 = vst.msk [vmem:[#allocation3 + $0x20] sm:$0xff] %vm2938_vm12, %v1311_v20 }
 0x1b8   : > { %v1452_v26 = vld [vmem:[#allocation3 + $0x18] sm:$0xff] }
 0x1b9   : > { %1903 = vmatmul.mubr.msk.bf16.gmra.mrb[4].mxu1 %vm2939_vm7, %v1452_v26  ;;  %v1356_v41 = vpop.permute.xlu0 %1355 }
 0x1ba   : > { %v1437_v5 = vpop.permute.xlu1 %1436  ;;  %1367 = vst.msk [vmem:[#allocation3 + $0x20] sm:$0xff] %vm1362_vm8, %v1356_v41  ;;  %1906 = vmatprep.mubr.msk.bf16.mxu1 %vm2865_vm11, %v2015_v1  ;;  %v1775_v1 = vld [vmem:[%s2832_s5] ss:$0 sm:$0xff]  ;;  %vm2941_vm11 = vcmask 60416  }
 0x1bb   : > { %1448 = vst.msk [vmem:[#allocation3 + $0x20] sm:$0xff] %vm1443_vm1, %v1437_v5  ;;  %vm2942_vm8 = vmmov %vm2941_vm11  ;;  %v1924_v24 = vadd.f32 %v1775_v1, %v1764_v10 }
 0x1c2   : > { %v1453_v38 = vld [vmem:[#allocation3 + $0x20] sm:$0xff] }
 0x1c3   : > { %1907 = vmatmul.mubr.msk.bf16.gmra.mrb[8].mxu1 %vm2940_vm15, %v1453_v38 }
 0x1db   : > { %v792_v42 = vpop.f32.mrb[20].mxu0 }
 0x1dc   : > { %v1862_v40 = vpop.f32.mrb[21].mxu0  ;;  %v793_v16 = vadd.f32 %v1764_v10, %v792_v42 }
 0x1dd   : > { %v795_v39 = vpop.f32.mrb[22].mxu0 }
 0x1de   : > { %v1863_v43 = vpop.f32.mrb[23].mxu0  ;;  %v796_v25 = vadd.f32 %v1764_v10, %v795_v39  ;;  %v1913_v17 = vadd.f32 %v1775_v1, %v793_v16 }
 0x1e0   : > { %v1916_v2 = vadd.f32 %v1775_v1, %v796_v25 }
 0x1e8   : > { %v800_v44 = vpop.f32.mrb[24].mxu0 }
 0x1e9   : > { %v1866_v46 = vpop.f32.mrb[25].mxu0  ;;  %v801_v21 = vadd.f32 %v1764_v10, %v800_v44 }
 0x1ea   : > { %v803_v13 = vpop.f32.mrb[26].mxu0 }
 0x1eb   : > { %v1867_v37 = vpop.f32.mrb[27].mxu0  ;;  %v804_v60 = vadd.f32 %v1764_v10, %v803_v13  ;;  %v1919_v61 = vadd.f32 %v1775_v1, %v801_v21 }
 0x1ed   : > { %v1922_v11 = vadd.f32 %v1775_v1, %v804_v60 }
 0x25c   : > { %v1551_v47 = vpop.f32.mrb[12].mxu1 }
 0x25d   : > { %v1914_v35 = vadd.f32 %v1913_v17, %v1551_v47  ;;  %v1892_v48 = vpop.f32.mrb[13].mxu1 }
 0x25e   : > { %v1554_v12 = vpop.f32.mrb[14].mxu1 }
 0x25f   : > { %v1600_v53 = vmax.f32 %v1914_v35, 0.0  ;;  %v1917_v9 = vadd.f32 %v1916_v2, %v1554_v12  ;;  %v1893_v14 = vpop.f32.mrb[15].mxu1 }
 0x261   : > { %v1610_v52 = vsel %vm2216_vm9, %v1600_v53, 0.0  ;;  %v1601_v56 = vmax.f32 %v1917_v9, 0.0  ;;  %vm2943_vm9 = vmmov %vm2942_vm8 }
 0x262   : > { %v1798_v15 = vpack.c.bf16 %v1610_v52, %v1610_v52 }
 0x263   : > { %v1611_v7 = vsel %vm2227_vm10, %v1601_v56, 0.0  ;;  %vm2944_vm10 = vmmov %vm2942_vm8 }
 0x264   : > { %1661 = vst.msk [vmem:[%s2122_s20 + $0x8] sm:$0xf] %vm2941_vm11, %v1798_v15  ;;  %v1799_v58 = vpack.c.bf16 %v1611_v7, %v1611_v7 }
 0x266   : > { %1662 = vst.msk [vmem:[%s2122_s20 + $0xc] sm:$0xf] %vm2942_vm8, %v1799_v58 }
 0x26c   : > { %v1559_v55 = vpop.f32.mrb[16].mxu1 }
 0x26d   : > { %v1920_v0 = vadd.f32 %v1919_v61, %v1559_v55  ;;  %v1896_v28 = vpop.f32.mrb[17].mxu1 }
 0x26e   : > { %v1562_v3 = vpop.f32.mrb[18].mxu1 }
 0x26f   : > { %v1602_v4 = vmax.f32 %v1920_v0, 0.0  ;;  %v1923_v54 = vadd.f32 %v1922_v11, %v1562_v3  ;;  %v1897_v8 = vpop.f32.mrb[19].mxu1 }
 0x271   : > { %v1612_v34 = vsel %vm2253_vm14, %v1602_v4, 0.0  ;;  %v1603_v18 = vmax.f32 %v1923_v54, 0.0 }
 0x272   : > { %v1800_v49 = vpack.c.bf16 %v1612_v34, %v1612_v34 }
 0x273   : > { %v1613_v19 = vsel %vm2263_vm0, %v1603_v18, 0.0  ;;  %vm2945_vm0 = vmmov %vm2942_vm8 }
 0x274   : > { %1663 = vst.msk [vmem:[%s2122_s20 + $0x10] sm:$0xf] %vm2943_vm9, %v1800_v49  ;;  %v1801_v63 = vpack.c.bf16 %v1613_v19, %v1613_v19  ;;  %vm2946_vm14 = vmmov %vm2945_vm0 }
 0x275   : > { %vm2949_vm1 = vmmov %vm2945_vm0 }
 0x276   : > { %1664 = vst.msk [vmem:[%s2122_s20 + $0x14] sm:$0xf] %vm2944_vm10, %v1801_v63  ;;  %vm2952_vm4 = vmmov %vm2945_vm0 }
 0x277   : > { %vm2953_vm6 = vmmov %vm2945_vm0 }
 0x27c   : > { %v1567_v23 = vpop.f32.mrb[0].mxu1 }
 0x27d   : > { %v1925_v62 = vadd.f32 %v1924_v24, %v1567_v23  ;;  %v1900_v32 = vpop.f32.mrb[1].mxu1 }
 0x27e   : > { %v1570_v29 = vpop.f32.mrb[2].mxu1 }
 0x27f   : > { %v1604_v27 = vmax.f32 %v1925_v62, 0.0  ;;  %v1927_v45 = vadd.f32 %v1924_v24, %v1570_v29  ;;  %v1901_v33 = vpop.f32.mrb[3].mxu1 }
 0x281   : > { %v1614_v36 = vsel %vm2343_vm2, %v1604_v27, 0.0  ;;  %v1605_v51 = vmax.f32 %v1927_v45, 0.0  ;;  %vm2947_vm2 = vnez %v2882_v30 }
 0x282   : > { %v1802_v20 = vpack.c.bf16 %v1614_v36, %v1614_v36 }
 0x283   : > { %v1615_v50 = vsel %vm2362_vm5, %v1605_v51, 0.0  ;;  %vm2948_vm5 = vmmov %vm2945_vm0 }
 0x284   : > { %1665 = vst.msk [vmem:[%s2122_s20 + $0x18] sm:$0xf] %vm2945_vm0, %v1802_v20  ;;  %v1803_v26 = vpack.c.bf16 %v1615_v50, %v1615_v50 }
 0x286   : > { %1666 = vst.msk [vmem:[%s2122_s20 + $0x1c] sm:$0xf] %vm2946_vm14, %v1803_v26 }
 0x28c   : > { %v1575_v5 = vpop.f32.mrb[4].mxu1 }
 0x28d   : > { %v1929_v41 = vadd.f32 %v1924_v24, %v1575_v5  ;;  %v1904_v38 = vpop.f32.mrb[5].mxu1 }
 0x28e   : > { %v1578_v42 = vpop.f32.mrb[6].mxu1 }
 0x28f   : > { %v1606_v40 = vmax.f32 %v1929_v41, 0.0  ;;  %v1931_v39 = vadd.f32 %v1924_v24, %v1578_v42  ;;  %v1905_v22 = vpop.f32.mrb[7].mxu1 }
 0x291   : > { %v1616_v43 = vsel %vm2432_vm13, %v1606_v40, 0.0  ;;  %v1607_v44 = vmax.f32 %v1931_v39, 0.0  ;;  %vm2950_vm13 = vnez %v2890_v57 }
 0x292   : > { %v1804_v31 = vpack.c.bf16 %v1616_v43, %v1616_v43 }
 0x293   : > { %v1617_v46 = vsel %vm2947_vm2, %v1607_v44, 0.0 }
 0x294   : > { %1667 = vst.msk [vmem:[%s2122_s20 + $0x20] sm:$0xf] %vm2948_vm5, %v1804_v31  ;;  %v1805_v13 = vpack.c.bf16 %v1617_v46, %v1617_v46 }
 0x296   : > { %1668 = vst.msk [vmem:[%s2122_s20 + $0x24] sm:$0xf] %vm2949_vm1, %v1805_v13  ;;  %v1583_v37 = vpop.f32.mrb[8].mxu1 }
 0x297   : > { %v1933_v10 = vadd.f32 %v1924_v24, %v1583_v37  ;;  %v1908_v16 = vpop.f32.mrb[9].mxu1 }
 0x298   : > { %v1586_v1 = vpop.f32.mrb[10].mxu1 }
 0x299   : > { %v1608_v25 = vmax.f32 %v1933_v10, 0.0  ;;  %v1935_v17 = vadd.f32 %v1924_v24, %v1586_v1  ;;  %v1909_v59 = vpop.f32.mrb[11].mxu1 }
 0x29b   : > { %v1618_v2 = vsel %vm2950_vm13, %v1608_v25, 0.0  ;;  %v1609_v47 = vmax.f32 %v1935_v17, 0.0 }
 0x29c   : > { %v1806_v30 = vpack.c.bf16 %v1618_v2, %v1618_v2 }
 0x29d   : > { %v1619_v35 = vsel %vm2951_vm3, %v1609_v47, 0.0 }
 0x29e   : > { %1669 = vst.msk [vmem:[%s2122_s20 + $0x28] sm:$0xf] %vm2952_vm4, %v1806_v30  ;;  %v1807_v48 = vpack.c.bf16 %v1619_v35, %v1619_v35 }
 0x2a0   : > { %1670 = vst.msk [vmem:[%s2122_s20 + $0x2c] sm:$0xf] %vm2953_vm6, %v1807_v48 }
 0x2a1 PF: > { %s18_s27 = sadd.s32 1, %s2013_s27  }
 0x2a2   : > { %p15_p4 = scmp.ge.s32.totalorder %s18_s27, 4  }
 0x2a4   :  { %17 = sbr.rel (!%p15_p4) target bundleno = 1 (0x1), region = 85 }

</bundles_post_ra>
